<compile_context>
chip_gen: v7x
topology: tpu7x:2x2x1
jax: 0.10.0
libtpu: 0.0.40
codegen_flags: <defaults>
</compile_context>

<pallas_src>
import functools

import jax
import jax.numpy as jnp
import numpy as np
from jax.experimental import pallas as pl
from jax.experimental.pallas import tpu as pltpu


# --------------------------------------------------------------------------
# Kernel
# --------------------------------------------------------------------------
def temp_embedder_kernel(x_ref, pool_ref, win_ref,
                         w1_ref, b1_ref, w2_ref, b2_ref,
                         w3_ref, b3_ref, w4_ref, b4_ref,
                         emb_ref, lw_ref):
    f32 = jnp.float32
    cdt = w1_ref.dtype                      # MXU operand dtype (bfloat16)

    Bb, T, D = emb_ref.shape                # batch block, target seq len, out dim
    S = pool_ref.shape[1]                   # input seq len
    W = win_ref.shape[0]                    # 4 * T (stacked windows)

    def act(v):                             # tanh-GELU -> EUP slot, not a VALU erf poly
        return jax.nn.gelu(v, approximate=True)

    # fc1 -> gelu -> fc2 -> gelu -> fc3 on the (Bb*S, Din) slab (batch folded into M).
    x = x_ref[...]                                                         # (Bb*S, Din)
    h = jnp.dot(x, w1_ref[...], preferred_element_type=f32) + b1_ref[...]
    h = act(h).astype(cdt)
    h = jnp.dot(h, w2_ref[...], preferred_element_type=f32) + b2_ref[...]
    h = act(h).astype(cdt)
    y = jnp.dot(h, w3_ref[...], preferred_element_type=f32) + b3_ref[...]  # (Bb*S, D) f32

    # Seq-group mean pool, batched per sample: (Bb,T,S) @ (Bb,S,D) -> (Bb,T,D).
    # The (T,S) operator is per-sample — no O(Bb^2) block-diagonal, no wasted MACs.
    y3 = y.reshape(Bb, S, D)                # leading-dim split (free, last dim unchanged)
    pooled = jax.lax.dot_general(
        jnp.broadcast_to(pool_ref[...], (Bb, T, S)), y3,
        dimension_numbers=(((2,), (1,)), ((0,), (0,))),
        preferred_element_type=f32)                                        # (Bb, T, D)
    pooled = act(pooled)

    # fc4 on (Bb*T, D) rows.
    emb = jnp.dot(pooled.reshape(Bb * T, D).astype(cdt), w4_ref[...],
                  preferred_element_type=f32) + b4_ref[...]                # (Bb*T, D) f32
    emb3 = emb.reshape(Bb, T, D)
    emb_ref[...] = emb3.astype(emb_ref.dtype)

    # All four local-window means in one batched matmul: (Bb,4T,T) @ (Bb,T,D).
    lw_ref[...] = jax.lax.dot_general(
        jnp.broadcast_to(win_ref[...], (Bb, W, T)), emb3,
        dimension_numbers=(((2,), (1,)), ((0,), (0,))),
        preferred_element_type=f32).astype(lw_ref.dtype)


# --------------------------------------------------------------------------
# Host-side averaging-operator construction (cached, per-sample — independent of Bb)
# --------------------------------------------------------------------------
def _pool_matrix(seq_len, seq_target_length):
    # P[t, s] = 1/g if token s belongs to group t (g consecutive tokens per group).
    g = seq_len // seq_target_length
    P = np.zeros((seq_target_length, seq_len), dtype=np.float32)
    for t in range(seq_target_length):
        P[t, t * g:(t + 1) * g] = 1.0 / g
    return P


def _window_matrix(T, k):
    # W[i, j] = 1/len over j in [max(i-k,0), min(i+k,T))  — matches the torch slicing
    # emb[:, max(i-k,0):min(i+k, T), :].mean(dim=1)  (upper bound i+k excluded).
    W = np.zeros((T, T), dtype=np.float32)
    for i in range(T):
        lo, hi = max(i - k, 0), min(i + k, T)
        W[i, lo:hi] = 1.0 / (hi - lo)
    return W


@functools.lru_cache(maxsize=None)
def _pool_and_window_matrices(seq_len, seq_target_length):
    P = _pool_matrix(seq_len, seq_target_length)                   # (T, S)
    Wstack = np.concatenate(
        [_window_matrix(seq_target_length, k) for k in (1, 2, 4, 8)], axis=0)  # (4T, T)
    return P, Wstack


# --------------------------------------------------------------------------
# One-time capability probe for single-buffered (Buffered(1)) constant operands
# --------------------------------------------------------------------------
@functools.lru_cache(maxsize=None)
def _supports_single_buffering():
    """Compile/run a tiny kernel once to check pipeline_mode=pl.Buffered(1) support."""
    if not hasattr(pl, "Buffered"):
        return False

    def _probe_kernel(x_ref, o_ref):
        o_ref[...] = x_ref[...] + 1.0

    try:
        spec = pl.BlockSpec((8, 128), lambda i: (0, 0), pipeline_mode=pl.Buffered(1))
        fn = pl.pallas_call(
            _probe_kernel,
            grid_spec=pl.GridSpec(
                grid=(2,),
                in_specs=[spec],
                out_specs=pl.BlockSpec((8, 128), lambda i: (0, 0))),
            out_shape=jax.ShapeDtypeStruct((8, 128), jnp.float32),
        )
        out = jax.block_until_ready(fn(jnp.zeros((8, 128), jnp.float32)))
        return bool(np.all(np.asarray(out) == 1.0))
    except Exception:
        return False


# --------------------------------------------------------------------------
# VMEM budgeting / batch-block selection
# --------------------------------------------------------------------------
_DEFAULT_VMEM_CAPACITY = 64 * 1024 * 1024   # conservative: v7x per-TensorCore VMEM


@functools.lru_cache(maxsize=None)
def _vmem_limit_bytes():
    cap = None
    try:
        info = pltpu.get_tpu_info()
        for name in ("vmem_capacity_bytes", "vmem_bytes", "vmem_size_bytes"):
            v = getattr(info, name, None)
            if v:
                cap = int(v)
                break
    except Exception:
        cap = None
    if not cap:
        cap = _DEFAULT_VMEM_CAPACITY
    # ~80% of physical with >= 8 MiB headroom: ~102 MiB on v5e/v6e (128 MiB parts),
    # ~51 MiB on v7x (64 MiB per TC) — per-generation guidance with one code path.
    return max(min(int(cap * 0.8), cap - (8 << 20)), 16 << 20)


def _estimate_vmem_bytes(Bb, S, Din, H, D, T):
    bf16, f32 = 2, 4
    x_in = 2 * Bb * S * Din * bf16                               # input block, 2 buffers
    outs = 2 * (Bb * T * D + Bb * 4 * T * D) * f32               # emb + windows, 2 buffers
    consts = (T * S + 4 * T * T) * f32                           # per-sample operators
    weights = (Din * H + H * H + H * D + D * D) * bf16 + 2 * (H + D) * 2 * f32
    # rough in-flight intermediates: f32 h/y + bf16 copies + broadcast operands
    live = Bb * S * (max(H, D) * (f32 + bf16) + D * f32) + Bb * (T * S + 4 * T * T) * f32
    return x_in + outs + consts + weights + live


def _pick_batch_block(bs, S, Din, H, D, T, vmem_budget_bytes, target_rows=1024):
    """Largest divisor of bs that fits the VMEM budget, keeps Bb*S around
    target_rows, and prefers an even number of grid steps (v7x megacore split)."""
    divisors = [c for c in range(1, bs + 1) if bs % c == 0]
    fits = [c for c in divisors
            if _estimate_vmem_bytes(c, S, Din, H, D, T) <= vmem_budget_bytes]
    if not fits:
        return 1
    capped = [c for c in fits if c * S <= target_rows] or [fits[0]]
    even = [c for c in capped if (bs // c) % 2 == 0]
    return max(even) if even else max(capped)


# --------------------------------------------------------------------------
# Wrapper
# --------------------------------------------------------------------------
def temp_embedder_forward(x, params, seq_target_length, batch_block=None):
    bs, S, Din = x.shape
    H = params["w1"].shape[1]
    D = params["w4"].shape[1]
    T = seq_target_length
    assert S % T == 0, "seq_len must be divisible by seq_target_length"
    # Note: S and T multiples of 8 keep the in-kernel leading-dim reshapes free
    # (true for the real config T=24 and for the demo shapes).

    vmem_limit = _vmem_limit_bytes()
    Bb = batch_block or _pick_batch_block(bs, S, Din, H, D, T, int(vmem_limit * 0.8))
    assert bs % Bb == 0
    nblk = bs // Bb

    P_np, W_np = _pool_and_window_matrices(S, T)
    pool = jnp.asarray(P_np)                                  # (T, S)   f32
    wins = jnp.asarray(W_np)                                  # (4T, T)  f32

    # bf16 activations/weights for the MXU; f32 accumulation inside the kernel.
    bf16 = jnp.bfloat16
    x2 = x.reshape(bs * S, Din).astype(bf16)                  # fold batch into M (free)
    w1 = params["w1"].astype(bf16); w2 = params["w2"].astype(bf16)
    w3 = params["w3"].astype(bf16); w4 = params["w4"].astype(bf16)
    b1, b2, b3, b4 = params["b1"], params["b2"], params["b3"], params["b4"]

    single_buf = _supports_single_buffering()

    def const_spec(shape):
        # Grid-invariant operand: constant index map; single-buffer when supported
        # (halves the VMEM held by weights — important headroom on v7x's 64 MiB).
        if single_buf:
            return pl.BlockSpec(shape, lambda *_: (0,) * len(shape),
                                pipeline_mode=pl.Buffered(1))
        return pl.BlockSpec(shape, lambda *_: (0,) * len(shape))

    in_specs = [
        pl.BlockSpec((Bb * S, Din), lambda b: (b, 0)),        # x batch block
        const_spec((T, S)),                                   # group-mean operator
        const_spec((4 * T, T)),                               # stacked window operator
        const_spec((Din, H)), const_spec((1, H)),             # fc1
        const_spec((H, H)), const_spec((1, H)),               # fc2
        const_spec((H, D)), const_spec((1, D)),               # fc3
        const_spec((D, D)), const_spec((1, D)),               # fc4
    ]
    out_specs = [
        pl.BlockSpec((Bb, T, D), lambda b: (b, 0, 0)),        # emb
        pl.BlockSpec((Bb, 4 * T, D), lambda b: (b, 0, 0)),    # stacked local windows
    ]
    out_shape = [
        jax.ShapeDtypeStruct((bs, T, D), jnp.float32),
        jax.ShapeDtypeStruct((bs, 4 * T, D), jnp.float32),
    ]

    emb, lw = pl.pallas_call(
        temp_embedder_kernel,
        grid_spec=pl.GridSpec(grid=(nblk,), in_specs=in_specs, out_specs=out_specs),
        out_shape=out_shape,
        compiler_params=pltpu.CompilerParams(
            dimension_semantics=("parallel",),
            vmem_limit_bytes=vmem_limit),
    )(x2, pool, wins, w1, b1, w2, b2, w3, b3, w4, b4)

    lw4 = lw.reshape(bs, 4, T, D)
    attend = None   # TODO(synk): class_token=True path needs the (unprovided) Atten module.
    return emb, lw4[:, 0], lw4[:, 1], lw4[:, 2], lw4[:, 3], attend


# --------------------------------------------------------------------------
# Pure-JAX reference (f32, exact-erf GELU — matches the PyTorch forward semantics)
# --------------------------------------------------------------------------
def reference_forward(x, params, seq_target_length):
    bs, S, Din = x.shape
    D = params["w4"].shape[1]
    T = seq_target_length
    gelu = lambda v: jax.nn.gelu(v, approximate=False)  # noqa: E731

    h = gelu(x @ params["w1"] + params["b1"])
    h = gelu(h @ params["w2"] + params["b2"])
    y = h @ params["w3"] + params["b3"]
    y = y.reshape(bs, T, -1, D).mean(axis=2)
    y = gelu(y)
    emb = y @ params["w4"] + params["b4"]

    def windows(k):
        cols = [emb[:, max(i - k, 0):min(i + k, T), :].mean(axis=1, keepdims=True)
                for i in range(T)]
        return jnp.concatenate(cols, axis=1)

    return emb, windows(1), windows(2), windows(4), windows(8), None


def init_params(key, input_size, hidden_size, output_size):
    ks = jax.random.split(key, 8)

    def w(k, fi, fo):
        return jax.random.normal(k, (fi, fo), jnp.float32) / np.sqrt(fi).astype(np.float32)

    def b(k, fo):
        return 0.02 * jax.random.normal(k, (1, fo), jnp.float32)

    return {
        "w1": w(ks[0], input_size, hidden_size),  "b1": b(ks[1], hidden_size),
        "w2": w(ks[2], hidden_size, hidden_size), "b2": b(ks[3], hidden_size),
        "w3": w(ks[4], hidden_size, output_size), "b3": b(ks[5], output_size),
        "w4": w(ks[6], output_size, output_size), "b4": b(ks[7], output_size),
    }


if __name__ == "__main__":
    # Small shapes consistent with the module's forward:
    #   x: (batch, seq_len, input_size), seq_len divisible by seq_target_length.
    bs, seq_len = 16, 16
    input_size, hidden_size, output_size = 128, 128, 128
    seq_target_length = 8

    key = jax.random.PRNGKey(0)
    kx, kp = jax.random.split(key)
    x = jax.random.normal(kx, (bs, seq_len, input_size), jnp.float32)
    params = init_params(kp, input_size, hidden_size, output_size)

    # Warm the one-time Buffered(1) capability probe eagerly (outside any jit trace).
    _supports_single_buffering()

    fwd = jax.jit(functools.partial(temp_embedder_forward,
                                    seq_target_length=seq_target_length))
    outs = jax.block_until_ready(fwd(x, params))

    # Reference: f32 math / exact-erf GELU (PyTorch semantics) on the same
    # bf16-quantised inputs/weights the kernel consumes.  Tolerance covers the
    # kernel's bf16 matmul operands and tanh-approx GELU.
    xq = x.astype(jnp.bfloat16).astype(jnp.float32)
    pq = {k: (v.astype(jnp.bfloat16).astype(jnp.float32) if k.startswith("w") else v)
          for k, v in params.items()}
    refs = reference_forward(xq, pq, seq_target_length)

    for got, want in zip(outs[:5], refs[:5]):
        np.testing.assert_allclose(np.asarray(got), np.asarray(want),
                                   rtol=5e-2, atol=5e-2)
    assert outs[5] is None

    print("KERNEL_OK")
</pallas_src>

<mosaic_0001>
module attributes {stable_mosaic.version = 11 : i64} {
  func.func @_probe_kernel(%arg0: i32, %arg1: memref<8x128xf32, #tpu.memory_space<vmem>>, %arg2: memref<8x128xf32, #tpu.memory_space<vmem>>) attributes {dimension_semantics = [#tpu.dimension_semantics<arbitrary>], iteration_bounds = array<i64: 2>, scalar_prefetch = 0 : i64, scratch_operands = 0 : i64, tpu.core_type = #tpu.core_type<tc>, window_params = [{pipeline_mode = #tpu.pipeline_mode<synchronous>, transform_indices = @transform_0, window_bounds = array<i64: 8, 128>}, {pipeline_mode = #tpu.pipeline_mode<synchronous>, transform_indices = @transform_1, window_bounds = array<i64: 8, 128>}]} {
    %c0 = arith.constant 0 : index
    %c0_0 = arith.constant 0 : index
    %0 = vector.load %arg1[%c0, %c0_0] : memref<8x128xf32, #tpu.memory_space<vmem>>, vector<8x128xf32>
    %cst = arith.constant 1.000000e+00 : f32
    %1 = vector.broadcast %cst : f32 to vector<8x128xf32>
    %2 = arith.addf %0, %1 : vector<8x128xf32>
    %c0_1 = arith.constant 0 : index
    %c0_2 = arith.constant 0 : index
    %3 = vector.load %arg2[%c0_1, %c0_2] : memref<8x128xf32, #tpu.memory_space<vmem>>, vector<8x128xf32>
    tpu.vector_store %arg2[%c0_1, %c0_2], %2 {strides = array<i32>} : memref<8x128xf32, #tpu.memory_space<vmem>>, vector<8x128xf32>,
    return
  }
  func.func @transform_0(%arg0: i32) -> (i32, i32) {
    %c0_i32 = arith.constant 0 : i32
    %c0_i32_0 = arith.constant 0 : i32
    %c0_i32_1 = arith.constant 0 : i32
    return %c0_i32, %c0_i32_0 : i32, i32
  }
  func.func @transform_1(%arg0: i32) -> (i32, i32) {
    %c0_i32 = arith.constant 0 : i32
    %c0_i32_0 = arith.constant 0 : i32
    %c0_i32_1 = arith.constant 0 : i32
    return %c0_i32, %c0_i32_0 : i32, i32
  }
}

module attributes {stable_mosaic.version = 11 : i64} {
  func.func @temp_embedder_kernel(%arg0: i32, %arg1: memref<128x128xbf16, #tpu.memory_space<vmem>>, %arg2: memref<8x16xf32, #tpu.memory_space<vmem>>, %arg3: memref<32x8xf32, #tpu.memory_space<vmem>>, %arg4: memref<128x128xbf16, #tpu.memory_space<vmem>>, %arg5: memref<1x128xf32, #tpu.memory_space<vmem>>, %arg6: memref<128x128xbf16, #tpu.memory_space<vmem>>, %arg7: memref<1x128xf32, #tpu.memory_space<vmem>>, %arg8: memref<128x128xbf16, #tpu.memory_space<vmem>>, %arg9: memref<1x128xf32, #tpu.memory_space<vmem>>, %arg10: memref<128x128xbf16, #tpu.memory_space<vmem>>, %arg11: memref<1x128xf32, #tpu.memory_space<vmem>>, %arg12: memref<8x8x128xf32, #tpu.memory_space<vmem>>, %arg13: memref<8x32x128xf32, #tpu.memory_space<vmem>>) attributes {dimension_semantics = [#tpu.dimension_semantics<parallel>], iteration_bounds = array<i64: 2>, scalar_prefetch = 0 : i64, scratch_operands = 0 : i64, tpu.core_type = #tpu.core_type<tc>, window_params = [{transform_indices = @transform_0, window_bounds = array<i64: 128, 128>}, {pipeline_mode = #tpu.pipeline_mode<synchronous>, transform_indices = @transform_1, window_bounds = array<i64: 8, 16>}, {pipeline_mode = #tpu.pipeline_mode<synchronous>, transform_indices = @transform_2, window_bounds = array<i64: 32, 8>}, {pipeline_mode = #tpu.pipeline_mode<synchronous>, transform_indices = @transform_3, window_bounds = array<i64: 128, 128>}, {pipeline_mode = #tpu.pipeline_mode<synchronous>, transform_indices = @transform_4, window_bounds = array<i64: 1, 128>}, {pipeline_mode = #tpu.pipeline_mode<synchronous>, transform_indices = @transform_5, window_bounds = array<i64: 128, 128>}, {pipeline_mode = #tpu.pipeline_mode<synchronous>, transform_indices = @transform_6, window_bounds = array<i64: 1, 128>}, {pipeline_mode = #tpu.pipeline_mode<synchronous>, transform_indices = @transform_7, window_bounds = array<i64: 128, 128>}, {pipeline_mode = #tpu.pipeline_mode<synchronous>, transform_indices = @transform_8, window_bounds = array<i64: 1, 128>}, {pipeline_mode = #tpu.pipeline_mode<synchronous>, transform_indices = @transform_9, window_bounds = array<i64: 128, 128>}, {pipeline_mode = #tpu.pipeline_mode<synchronous>, transform_indices = @transform_10, window_bounds = array<i64: 1, 128>}, {transform_indices = @transform_11, window_bounds = array<i64: 8, 8, 128>}, {transform_indices = @transform_12, window_bounds = array<i64: 8, 32, 128>}]} {
    %c0 = arith.constant 0 : index
    %c0_0 = arith.constant 0 : index
    %0 = vector.load %arg1[%c0, %c0_0] : memref<128x128xbf16, #tpu.memory_space<vmem>>, vector<128x128xbf16>
    %c0_1 = arith.constant 0 : index
    %c0_2 = arith.constant 0 : index
    %1 = vector.load %arg4[%c0_1, %c0_2] : memref<128x128xbf16, #tpu.memory_space<vmem>>, vector<128x128xbf16>
    %cst = arith.constant dense<0.000000e+00> : vector<128x128xf32>
    %2 = tpu.matmul %0, %1, %cst {dimension_numbers = #tpu.dot_dimension_numbers<[1], [0], [0], [1], [0, 0, 1, 1], [], []>} : vector<128x128xbf16>, vector<128x128xbf16>, vector<128x128xf32> -> vector<128x128xf32>
    %c0_3 = arith.constant 0 : index
    %c0_4 = arith.constant 0 : index
    %3 = vector.load %arg5[%c0_3, %c0_4] : memref<1x128xf32, #tpu.memory_space<vmem>>, vector<1x128xf32>
    %4 = vector.broadcast %3 : vector<1x128xf32> to vector<128x128xf32>
    %5 = arith.addf %2, %4 : vector<128x128xf32>
    %6 = arith.mulf %5, %5 : vector<128x128xf32>
    %7 = arith.mulf %5, %6 : vector<128x128xf32>
    %cst_5 = arith.constant 4.471500e-02 : f32
    %8 = vector.broadcast %cst_5 : f32 to vector<128x128xf32>
    %9 = arith.mulf %8, %7 : vector<128x128xf32>
    %10 = arith.addf %5, %9 : vector<128x128xf32>
    %cst_6 = arith.constant 0.797884583 : f32
    %11 = vector.broadcast %cst_6 : f32 to vector<128x128xf32>
    %12 = arith.mulf %11, %10 : vector<128x128xf32>
    %13 = math.tanh %12 : vector<128x128xf32>
    %cst_7 = arith.constant 1.000000e+00 : f32
    %14 = vector.broadcast %cst_7 : f32 to vector<128x128xf32>
    %15 = arith.addf %14, %13 : vector<128x128xf32>
    %cst_8 = arith.constant 5.000000e-01 : f32
    %16 = vector.broadcast %cst_8 : f32 to vector<128x128xf32>
    %17 = arith.mulf %16, %15 : vector<128x128xf32>
    %18 = arith.mulf %5, %17 : vector<128x128xf32>
    %19 = arith.truncf %18 : vector<128x128xf32> to vector<128x128xbf16>
    %c0_9 = arith.constant 0 : index
    %c0_10 = arith.constant 0 : index
    %20 = vector.load %arg6[%c0_9, %c0_10] : memref<128x128xbf16, #tpu.memory_space<vmem>>, vector<128x128xbf16>
    %cst_11 = arith.constant dense<0.000000e+00> : vector<128x128xf32>
    %21 = tpu.matmul %19, %20, %cst_11 {dimension_numbers = #tpu.dot_dimension_numbers<[1], [0], [0], [1], [0, 0, 1, 1], [], []>} : vector<128x128xbf16>, vector<128x128xbf16>, vector<128x128xf32> -> vector<128x128xf32>
    %c0_12 = arith.constant 0 : index
    %c0_13 = arith.constant 0 : index
    %22 = vector.load %arg7[%c0_12, %c0_13] : memref<1x128xf32, #tpu.memory_space<vmem>>, vector<1x128xf32>
    %23 = vector.broadcast %22 : vector<1x128xf32> to vector<128x128xf32>
    %24 = arith.addf %21, %23 : vector<128x128xf32>
    %25 = arith.mulf %24, %24 : vector<128x128xf32>
    %26 = arith.mulf %24, %25 : vector<128x128xf32>
    %cst_14 = arith.constant 4.471500e-02 : f32
    %27 = vector.broadcast %cst_14 : f32 to vector<128x128xf32>
    %28 = arith.mulf %27, %26 : vector<128x128xf32>
    %29 = arith.addf %24, %28 : vector<128x128xf32>
    %cst_15 = arith.constant 0.797884583 : f32
    %30 = vector.broadcast %cst_15 : f32 to vector<128x128xf32>
    %31 = arith.mulf %30, %29 : vector<128x128xf32>
    %32 = math.tanh %31 : vector<128x128xf32>
    %cst_16 = arith.constant 1.000000e+00 : f32
    %33 = vector.broadcast %cst_16 : f32 to vector<128x128xf32>
    %34 = arith.addf %33, %32 : vector<128x128xf32>
    %cst_17 = arith.constant 5.000000e-01 : f32
    %35 = vector.broadcast %cst_17 : f32 to vector<128x128xf32>
    %36 = arith.mulf %35, %34 : vector<128x128xf32>
    %37 = arith.mulf %24, %36 : vector<128x128xf32>
    %38 = arith.truncf %37 : vector<128x128xf32> to vector<128x128xbf16>
    %c0_18 = arith.constant 0 : index
    %c0_19 = arith.constant 0 : index
    %39 = vector.load %arg8[%c0_18, %c0_19] : memref<128x128xbf16, #tpu.memory_space<vmem>>, vector<128x128xbf16>
    %cst_20 = arith.constant dense<0.000000e+00> : vector<128x128xf32>
    %40 = tpu.matmul %38, %39, %cst_20 {dimension_numbers = #tpu.dot_dimension_numbers<[1], [0], [0], [1], [0, 0, 1, 1], [], []>} : vector<128x128xbf16>, vector<128x128xbf16>, vector<128x128xf32> -> vector<128x128xf32>
    %c0_21 = arith.constant 0 : index
    %c0_22 = arith.constant 0 : index
    %41 = vector.load %arg9[%c0_21, %c0_22] : memref<1x128xf32, #tpu.memory_space<vmem>>, vector<1x128xf32>
    %42 = vector.broadcast %41 : vector<1x128xf32> to vector<128x128xf32>
    %43 = arith.addf %40, %42 : vector<128x128xf32>
    %44 = vector.shape_cast %43 : vector<128x128xf32> to vector<8x16x128xf32>
    %c0_23 = arith.constant 0 : index
    %c0_24 = arith.constant 0 : index
    %45 = vector.load %arg2[%c0_23, %c0_24] : memref<8x16xf32, #tpu.memory_space<vmem>>, vector<8x16xf32>
    %46 = vector.shape_cast %45 : vector<8x16xf32> to vector<1x8x16xf32>
    %47 = vector.broadcast %46 : vector<1x8x16xf32> to vector<8x8x16xf32>
    %cst_25 = arith.constant dense<0.000000e+00> : vector<8x8x128xf32>
    %48 = tpu.matmul %47, %44, %cst_25 {dimension_numbers = #tpu.dot_dimension_numbers<[2], [1], [1], [2], [0, 0, 0, 1, 1, 2], [0], [0]>} : vector<8x8x16xf32>, vector<8x16x128xf32>, vector<8x8x128xf32> -> vector<8x8x128xf32>
    %49 = arith.mulf %48, %48 : vector<8x8x128xf32>
    %50 = arith.mulf %48, %49 : vector<8x8x128xf32>
    %cst_26 = arith.constant 4.471500e-02 : f32
    %51 = vector.broadcast %cst_26 : f32 to vector<8x8x128xf32>
    %52 = arith.mulf %51, %50 : vector<8x8x128xf32>
    %53 = arith.addf %48, %52 : vector<8x8x128xf32>
    %cst_27 = arith.constant 0.797884583 : f32
    %54 = vector.broadcast %cst_27 : f32 to vector<8x8x128xf32>
    %55 = arith.mulf %54, %53 : vector<8x8x128xf32>
    %56 = math.tanh %55 : vector<8x8x128xf32>
    %cst_28 = arith.constant 1.000000e+00 : f32
    %57 = vector.broadcast %cst_28 : f32 to vector<8x8x128xf32>
    %58 = arith.addf %57, %56 : vector<8x8x128xf32>
    %cst_29 = arith.constant 5.000000e-01 : f32
    %59 = vector.broadcast %cst_29 : f32 to vector<8x8x128xf32>
    %60 = arith.mulf %59, %58 : vector<8x8x128xf32>
    %61 = arith.mulf %48, %60 : vector<8x8x128xf32>
    %62 = vector.shape_cast %61 : vector<8x8x128xf32> to vector<64x128xf32>
    %63 = arith.truncf %62 : vector<64x128xf32> to vector<64x128xbf16>
    %c0_30 = arith.constant 0 : index
    %c0_31 = arith.constant 0 : index
    %64 = vector.load %arg10[%c0_30, %c0_31] : memref<128x128xbf16, #tpu.memory_space<vmem>>, vector<128x128xbf16>
    %cst_32 = arith.constant dense<0.000000e+00> : vector<64x128xf32>
    %65 = tpu.matmul %63, %64, %cst_32 {dimension_numbers = #tpu.dot_dimension_numbers<[1], [0], [0], [1], [0, 0, 1, 1], [], []>} : vector<64x128xbf16>, vector<128x128xbf16>, vector<64x128xf32> -> vector<64x128xf32>
    %c0_33 = arith.constant 0 : index
    %c0_34 = arith.constant 0 : index
    %66 = vector.load %arg11[%c0_33, %c0_34] : memref<1x128xf32, #tpu.memory_space<vmem>>, vector<1x128xf32>
    %67 = vector.broadcast %66 : vector<1x128xf32> to vector<64x128xf32>
    %68 = arith.addf %65, %67 : vector<64x128xf32>
    %69 = vector.shape_cast %68 : vector<64x128xf32> to vector<8x8x128xf32>
    %c0_35 = arith.constant 0 : index
    %c0_36 = arith.constant 0 : index
    %c0_37 = arith.constant 0 : index
    %70 = vector.load %arg12[%c0_35, %c0_36, %c0_37] : memref<8x8x128xf32, #tpu.memory_space<vmem>>, vector<8x8x128xf32>
    tpu.vector_store %arg12[%c0_35, %c0_36, %c0_37], %69 {strides = array<i32>} : memref<8x8x128xf32, #tpu.memory_space<vmem>>, vector<8x8x128xf32>,
    %c0_38 = arith.constant 0 : index
    %c0_39 = arith.constant 0 : index
    %71 = vector.load %arg3[%c0_38, %c0_39] : memref<32x8xf32, #tpu.memory_space<vmem>>, vector<32x8xf32>
    %72 = vector.shape_cast %71 : vector<32x8xf32> to vector<1x32x8xf32>
    %73 = vector.broadcast %72 : vector<1x32x8xf32> to vector<8x32x8xf32>
    %cst_40 = arith.constant dense<0.000000e+00> : vector<8x32x128xf32>
    %74 = tpu.matmul %73, %69, %cst_40 {dimension_numbers = #tpu.dot_dimension_numbers<[2], [1], [1], [2], [0, 0, 0, 1, 1, 2], [0], [0]>} : vector<8x32x8xf32>, vector<8x8x128xf32>, vector<8x32x128xf32> -> vector<8x32x128xf32>
    %c0_41 = arith.constant 0 : index
    %c0_42 = arith.constant 0 : index
    %c0_43 = arith.constant 0 : index
    %75 = vector.load %arg13[%c0_41, %c0_42, %c0_43] : memref<8x32x128xf32, #tpu.memory_space<vmem>>, vector<8x32x128xf32>
    tpu.vector_store %arg13[%c0_41, %c0_42, %c0_43], %74 {strides = array<i32>} : memref<8x32x128xf32, #tpu.memory_space<vmem>>, vector<8x32x128xf32>,
    return
  }
  func.func @transform_0(%arg0: i32) -> (i32, i32) {
    %c0_i32 = arith.constant 0 : i32
    %c0_i32_0 = arith.constant 0 : i32
    return %arg0, %c0_i32 : i32, i32
  }
  func.func @transform_1(%arg0: i32) -> (i32, i32) {
    %c0_i32 = arith.constant 0 : i32
    %c0_i32_0 = arith.constant 0 : i32
    %c0_i32_1 = arith.constant 0 : i32
    return %c0_i32, %c0_i32_0 : i32, i32
  }
  func.func @transform_2(%arg0: i32) -> (i32, i32) {
    %c0_i32 = arith.constant 0 : i32
    %c0_i32_0 = arith.constant 0 : i32
    %c0_i32_1 = arith.constant 0 : i32
    return %c0_i32, %c0_i32_0 : i32, i32
  }
  func.func @transform_3(%arg0: i32) -> (i32, i32) {
    %c0_i32 = arith.constant 0 : i32
    %c0_i32_0 = arith.constant 0 : i32
    %c0_i32_1 = arith.constant 0 : i32
    return %c0_i32, %c0_i32_0 : i32, i32
  }
  func.func @transform_4(%arg0: i32) -> (i32, i32) {
    %c0_i32 = arith.constant 0 : i32
    %c0_i32_0 = arith.constant 0 : i32
    %c0_i32_1 = arith.constant 0 : i32
    return %c0_i32, %c0_i32_0 : i32, i32
  }
  func.func @transform_5(%arg0: i32) -> (i32, i32) {
    %c0_i32 = arith.constant 0 : i32
    %c0_i32_0 = arith.constant 0 : i32
    %c0_i32_1 = arith.constant 0 : i32
    return %c0_i32, %c0_i32_0 : i32, i32
  }
  func.func @transform_6(%arg0: i32) -> (i32, i32) {
    %c0_i32 = arith.constant 0 : i32
    %c0_i32_0 = arith.constant 0 : i32
    %c0_i32_1 = arith.constant 0 : i32
    return %c0_i32, %c0_i32_0 : i32, i32
  }
  func.func @transform_7(%arg0: i32) -> (i32, i32) {
    %c0_i32 = arith.constant 0 : i32
    %c0_i32_0 = arith.constant 0 : i32
    %c0_i32_1 = arith.constant 0 : i32
    return %c0_i32, %c0_i32_0 : i32, i32
  }
  func.func @transform_8(%arg0: i32) -> (i32, i32) {
    %c0_i32 = arith.constant 0 : i32
    %c0_i32_0 = arith.constant 0 : i32
    %c0_i32_1 = arith.constant 0 : i32
    return %c0_i32, %c0_i32_0 : i32, i32
  }
  func.func @transform_9(%arg0: i32) -> (i32, i32) {
    %c0_i32 = arith.constant 0 : i32
    %c0_i32_0 = arith.constant 0 : i32
    %c0_i32_1 = arith.constant 0 : i32
    return %c0_i32, %c0_i32_0 : i32, i32
  }
  func.func @transform_10(%arg0: i32) -> (i32, i32) {
    %c0_i32 = arith.constant 0 : i32
    %c0_i32_0 = arith.constant 0 : i32
    %c0_i32_1 = arith.constant 0 : i32
    return %c0_i32, %c0_i32_0 : i32, i32
  }
  func.func @transform_11(%arg0: i32) -> (i32, i32, i32) {
    %c0_i32 = arith.constant 0 : i32
    %c0_i32_0 = arith.constant 0 : i32
    %c0_i32_1 = arith.constant 0 : i32
    return %arg0, %c0_i32, %c0_i32_0 : i32, i32, i32
  }
  func.func @transform_12(%arg0: i32) -> (i32, i32, i32) {
    %c0_i32 = arith.constant 0 : i32
    %c0_i32_0 = arith.constant 0 : i32
    %c0_i32_1 = arith.constant 0 : i32
    return %arg0, %c0_i32, %c0_i32_0 : i32, i32, i32
  }
}

</mosaic_0001>

<bundles_post_ra>
// kernel: tpu_custom_call.1
= control target key start
LH: loop header
LB: loop body
LE: loop exit
PB: predicated region body
PF: predicated region fallthrough
CT: control target
= control target key end

     0   :  { %6 = vsyncpa [#allocation3], 0  ;;  %s341_s0 = inlined_call_operand.hbm [shape: f32[8,128], index: 0, kind: input, shape index: {}]   ;;  %s342_s1 = inlined_call_operand.hbm [shape: f32[8,128], index: 1, kind: output, shape index: {}]  }
   0x1   :  { %7 = vsyncpa [#allocation4], 0  ;;  %s262_s6 = smov 0  }
   0x2 LB: > { %s145_s7 = sadd.s32 4294967295, %s248_s6   ;;  %p146_p0 = scmp.ge.s32.totalorder %s248_s6, 1  ;;  %s248_s6 = sphi %s262_s6, %s13_s6  }
   0x3   : > { %p60_p1 = scmp.lt.s32.totalorder %s248_s6, 3  ;;  %p276_p3 = scmp.eq.s32.totalorder %s145_s7, 0 }
   0x4   : > { %s250_s10 = smov [#allocation2]   ;;  %s180_s15 = scalar_lea.hbm %s341_s0, 128 }
   0x5   : > { %p270_p2 = pnand %p146_p0, %p60_p1  ;;  %s73_s11 = sshll.u32 %s250_s10, 4  ;;  %s74_s11 = int_to_ptr.vmem [resolvable:$true] %s73_s11 }
   0x6   : > { %s347_s9 = scalar_select %p276_p3, 1, 0 }
   0x7   : > { %s346_s8 = scalar_select %p270_p2, 1, 0 }
   0x8   : > { %p162_p4 = pneg %p270_p2  ;;  %p181_p6 = scmp.ne.s32.totalorder %s341_s0, %s180_s15 }
   0x9   : > { %p187_p10 = scmp.lt.u32.totalorder %s180_s15, %s341_s0 }
   0xa   : > { %p284_p5 = pnand %p276_p3, %p162_p4 }
   0xc   : > { %p182_p7 = pneg %p284_p5 }
   0xe   : > { %p183_p8 = pnand %p182_p7, %p181_p6 }
  0x10   : > { %p184_p9 = pneg %p183_p8 }
  0x12   : > { %p189_p11 = pnand %p187_p10, %p184_p9 }
  0x14   : > { %192 = shalt.err (!%p189_p11)
}
  0x15   : > { %s193_s20 = scalar_lea.vmem %s74_s11, 128  ;;  %p201_p1 = scmp.lt.s32.totalorder %s74_s11, %s74_s11 }
  0x16   : > { %p194_p12 = scmp.ne.s32.totalorder %s74_s11, %s193_s20  ;;  %p202_p4 = scmp.lt.s32.totalorder %s193_s20, %s193_s20 }
  0x18   : > { %p196_p13 = pnand %p194_p12, %p182_p7  ;;  %p203_p3 = por %p202_p4, %p201_p1 }
  0x1a   : > { %p197_p0 = pneg %p196_p13 }
  0x1c   : > { %p204_p2 = pnand %p203_p3, %p197_p0 }
  0x1e   : > { %207 = shalt.err (!%p204_p2)
}
  0x1f   : > { %165 = dma.hbm_to_vmem [thread:$0]  (!%p284_p5), %s341_s0, 128, %s74_s11, [#allocation3]  }
  0x20   : > { %p349_p6 = scmp.ne.s32.totalorder %s346_s8, 0 }
  0x21   : > { %p350_p8 = scmp.ne.s32.totalorder (!%p349_p6), %s347_s9, 0 }
  0x22   : > { %86 = sbr.rel (%p349_p6) target bundleno = 67 (0x43), region = 24 }
  0x29   : > { %239 = dma.done.wait (%p350_p8), [#allocation3], 128  }
  0x2a   : > { %241 = vsyncadd (%p350_p8), [#allocation3], 4294967168  ;;  %s251_s23 = smov [#allocation5]   ;;  %v96_v0 = vld [vmem:[#allocation2] sm:$0xff]  ;;  %p312_p2 = scmp.eq.s32.totalorder %s145_s7, 1 }
  0x2b   : > { %s106_s24 = sshll.u32 %s251_s23, 4  ;;  %v97_v1 = vadd.f32 1.0, %v96_v0  ;;  %s107_s24 = int_to_ptr.vmem [resolvable:$true] %s106_s24 }
  0x2c   : > { %s208_s26 = scalar_lea.vmem %s107_s24, 128  ;;  %p215_p9 = scmp.lt.s32.totalorder %s107_s24, %s107_s24 }
  0x2d   : > { %98 = vst [vmem:[#allocation5] sm:$0xff] %v97_v1  ;;  %p209_p3 = scmp.ne.s32.totalorder %s107_s24, %s208_s26  ;;  %p216_p10 = scmp.lt.s32.totalorder %s208_s26, %s208_s26 }
  0x2f   : > { %p210_p5 = pnand %p209_p3, %p312_p2  ;;  %p217_p11 = por %p216_p10, %p215_p9 }
  0x31   : > { %p211_p7 = pneg %p210_p5 }
  0x33   : > { %p218_p12 = pnand %p217_p11, %p211_p7 }
  0x35   : > { %221 = shalt.err (!%p218_p12)
}
  0x36   : > { %s222_s29 = scalar_lea.hbm %s342_s1, 128 }
  0x37   : > { %p223_p13 = scmp.ne.s32.totalorder %s342_s1, %s222_s29  ;;  %p228_p4 = scmp.lt.u32.totalorder %s222_s29, %s342_s1 }
  0x39   : > { %p224_p0 = pnand %p223_p13, %p312_p2 }
  0x3b   : > { %p225_p1 = pneg %p224_p0 }
  0x3d   : > { %p230_p6 = pnand %p228_p4, %p225_p1 }
  0x3f   : > { %233 = shalt.err (!%p230_p6)
}
  0x40   : > { %159 = dma.vmem_to_hbm [thread:$0]  (%p312_p2), %s107_s24, 128, %s342_s1, [#allocation4]  }
  0x41   : > { %243 = dma.done.wait (%p312_p2), [#allocation4], 128  }
  0x42   : > { %245 = vsyncadd (%p312_p2), [#allocation4], 4294967168 }
  0x43 PF: > { %s13_s6 = sadd.s32 1, %s248_s6  }
  0x44   : > { %p10_p8 = scmp.ge.s32.totalorder %s13_s6, 4  }
  0x46   :  { %12 = sbr.rel (!%p10_p8) target bundleno = 2 (0x2), region = 53 }
  0x4d   :  { %119 = vsyncpa [#allocation3], 1 }
  0x4e   :  { %121 = vsyncpa [#allocation3 + $0x1], 1 }
  0x4f   :  { %122 = vsyncpa [#allocation4], 1 }
  0x50   :  { %124 = vsyncpa [#allocation4 + $0x1], 1 }

// kernel: temp_embedder_forward.1
= control target key start
LH: loop header
LB: loop body
LE: loop exit
PB: predicated region body
PF: predicated region fallthrough
CT: control target
= control target key end

     0   :  { %s4361_s0 = inlined_call_operand.vmem [shape: bf16[256,128], index: 0, kind: input, shape index: {}]   ;;  %s4362_s1 = inlined_call_operand.vmem [shape: f32[8,16], index: 1, kind: input, shape index: {}]   ;;  %s4363_s2 = inlined_call_operand.vmem [shape: f32[32,8], index: 2, kind: input, shape index: {}]   ;;  %s4364_s3 = inlined_call_operand.vmem [shape: bf16[128,128], index: 3, kind: input, shape index: {}]   ;;  %s4365_s4 = inlined_call_operand.vmem [shape: f32[1,128], index: 4, kind: input, shape index: {}]   ;;  %s4366_s5 = inlined_call_operand.vmem [shape: bf16[128,128], index: 5, kind: input, shape index: {}]   ;;  %s4367_s6 = inlined_call_operand.vmem [shape: f32[1,128], index: 6, kind: input, shape index: {}]   ;;  %s4368_s7 = inlined_call_operand.vmem [shape: bf16[128,128], index: 7, kind: input, shape index: {}]   ;;  %s4369_s8 = inlined_call_operand.vmem [shape: f32[1,128], index: 8, kind: input, shape index: {}]   ;;  %s4370_s9 = inlined_call_operand.vmem [shape: bf16[128,128], index: 9, kind: input, shape index: {}]   ;;  %s4371_s10 = inlined_call_operand.vmem [shape: f32[1,128], index: 10, kind: input, shape index: {}]   ;;  %s4372_s11 = inlined_call_operand.hbm [shape: f32[16,8,128], index: 11, kind: output, shape index: {0}]   ;;  %s4373_s12 = inlined_call_operand.vmem [shape: f32[16,32,128], index: 12, kind: output, shape index: {1}]  }
   0x1   :  { %4374 = sst [smem:[#allocation6_spill]] %s4361_s0 }
   0x2   :  { %18 = vsyncpa [#allocation3], 0 }
   0x3   :  { %20 = vsyncpa [#allocation3 + $0x1], 0  ;;  %s3718_s21 = smov 0   ;;  %s3720_s22 = smov 0  }
   0x4   :  { %s3722_s23 = smov 0   ;;  %s3724_s24 = smov 0  }
   0x5 LB: > { %s3739_s25 = sadd.s32 4294967295, %s3645_s24   ;;  %s2930_s26 = sadd.s32 4294967294, %s3645_s24   ;;  %s3645_s24 = sphi %s3724_s24, %s4383_s24   ;;  %s3641_s23 = sphi %s3722_s23, %s4382_s23   ;;  %s3637_s22 = sphi %s3720_s22, %s4381_s22   ;;  %s3633_s21 = sphi %s3718_s21, %s4380_s21  }
   0x6   : > { %s3743_s27 = sadd.s32 1, %s3645_s24   ;;  %s269_s28 = sadd.s32 1, %s3641_s23 }
   0x7   : > { %s266_s29 = ssub.s32 %s3645_s24, %s3743_s27  ;;  %p279_p0 = scmp.ne.s32.totalorder %s3641_s23, %s3637_s22 }
   0x8   : > { %p267_p1 = scmp.eq.s32.totalorder %s266_s29, 0  ;;  %p280_p2 = scmp.eq.s32.totalorder %s3739_s25, 1 }
   0x9   : > { %p285_p3 = scmp.ne.s32.totalorder %s3637_s22, %s3633_s21  ;;  %p286_p4 = scmp.eq.s32.totalorder %s2930_s26, 1 }
   0xa   : > { %s3754_s30 = scalar_select %p267_p1, %s3641_s23, %s269_s28  }
   0xb   : > { %p3756_p5 = por %p280_p2, %p279_p0  ;;  %p3760_p6 = por %p286_p4, %p285_p3 }
   0xc   : > { %4375 = sst [smem:[#allocation5_spill]] %s3754_s30  ;;  %p2933_p7 = scmp.ge.s32.totalorder %s3645_s24, 1 }
   0xd   : > { %p369_p8 = scmp.lt.s32.totalorder %s3645_s24, 3 }
   0xf   : > { %p370_p9 = pnand %p2933_p7, %p369_p8 }
  0x10   : > { %v3463_v0 = vld [vmem:[%s4364_s3] sm:$0xff] (!%p370_p9)   ;;  %s2935_s17 = sshll.u32 (!%p370_p9), %s3739_s25, 4  ;;  %v3464_v1 = vld [vmem:[%s4364_s3 + $0x8] sm:$0xff] (!%p370_p9)   ;;  %v3465_v2 = vld [vmem:[%s4364_s3 + $0x10] sm:$0xff] (!%p370_p9)   ;;  %s4378_s0 = sld [smem:[#allocation6_spill]] (!%p370_p9)  ;;  %vm3648_vm0 = vmmov (!%p370_p9), 0  }
  0x11   : > { %373 = sbr.rel (%p370_p9) target bundleno = 1494 (0x5d6), region = 64  ;;  %p418_p10 = scmp.lt.s32.totalorder (!%p370_p9), %s2935_s17, 31  ;;  %3155 = vmatprep.subr.bf16.mxu0 (!%p370_p9), %v3463_v0  ;;  %v3466_v3 = vld [vmem:[%s4364_s3 + $0x18] sm:$0xff] (!%p370_p9)   ;;  %v3467_v5 = vld [vmem:[%s4364_s3 + $0x20] sm:$0xff] (!%p370_p9)   ;;  %v3468_v6 = vld [vmem:[%s4364_s3 + $0x28] sm:$0xff] (!%p370_p9)   ;;  %vm1305_vm1 = vcmask (!%p370_p9), 130048  }
  0x12   : > { %3156 = vmatpush3.bf16.msra.mxu0 (!%p370_p9), %v3463_v0  ;;  %v3469_v7 = vld [vmem:[%s4364_s3 + $0x30] sm:$0xff] (!%p370_p9)   ;;  %v3470_v8 = vld [vmem:[%s4364_s3 + $0x38] sm:$0xff] (!%p370_p9)   ;;  %v3479_v16 = vld [vmem:[%s4366_s5] sm:$0xff] (!%p370_p9)   ;;  %vm2093_vm2 = vcmask (!%p370_p9), 64512   ;;  %s406_s29 = sand.u32 (!%p370_p9), 1, %s3637_s22   ;;  %s3030_s18 = sshll.u32 (!%p370_p9), %s3739_s25, 10 }
  0x13   : > { %3157 = vmatprep.subr.bf16.mxu0 (!%p370_p9), %v3464_v1  ;;  %3187 = vmatprep.subr.bf16.mxu1 (!%p370_p9), %v3479_v16  ;;  %v3480_v17 = vld [vmem:[%s4366_s5 + $0x8] sm:$0xff] (!%p370_p9)   ;;  %v3481_v18 = vld [vmem:[%s4366_s5 + $0x10] sm:$0xff] (!%p370_p9)   ;;  %v3482_v19 = vld [vmem:[%s4366_s5 + $0x18] sm:$0xff] (!%p370_p9)   ;;  %s2934_s16 = sshll.u32 (!%p370_p9), %s406_s29, 6  ;;  %s4276_s26 = scalar_lea.hbm (!%p370_p9), %s4372_s11, %s3030_s18 }
  0x14   : > { %3188 = vmatpush3.bf16.msra.mxu1 (!%p370_p9), %v3479_v16  ;;  %v3483_v20 = vld [vmem:[%s4366_s5 + $0x20] sm:$0xff] (!%p370_p9)   ;;  %v3484_v21 = vld [vmem:[%s4366_s5 + $0x28] sm:$0xff] (!%p370_p9)   ;;  %v3485_v22 = vld [vmem:[%s4366_s5 + $0x30] sm:$0xff] (!%p370_p9)  }
  0x15   : > { %3189 = vmatprep.subr.bf16.mxu1 (!%p370_p9), %v3480_v17  ;;  %v3486_v23 = vld [vmem:[%s4366_s5 + $0x38] sm:$0xff] (!%p370_p9)   ;;  %v3831_v24 = vld [vmem:[%s4365_s4] ss:$0 sm:$0xff] (!%p370_p9) }
  0x16   : > { %3158 = vmatpush3.bf16.msra.mxu0 (!%p370_p9), %v3464_v1 }
  0x17   : > { %3159 = vmatprep.subr.bf16.mxu0 (!%p370_p9), %v3465_v2 }
  0x18   : > { %s4385_s17 = smov (!%p418_p10, %s2935_s17), 31  ;;  %3190 = vmatpush3.bf16.msra.mxu1 %v3480_v17 }
  0x19   : > { %s2936_s28 = sshll.u32 %s4385_s17, 2  ;;  %3191 = vmatprep.subr.bf16.mxu1 %v3481_v18  ;;  %s4216_s17 = scalar_lea.vmem [#allocation2], %s2934_s16 }
  0x1a   : > { %s3779_s15 = scalar_lea.vmem %s4378_s0, %s2936_s28  ;;  %3160 = vmatpush3.bf16.msra.mxu0 %v3465_v2  ;;  %s2838_s19 = sshll.u32 %s4216_s17, 4  ;;  %s4278_s19 = int_to_ptr.vmem [resolvable:$true] %s2838_s19 }
  0x1b   : > { %v3471_v4 = vld [vmem:[%s3779_s15] sm:$0xff]   ;;  %3161 = vmatprep.subr.bf16.mxu0 %v3466_v3  ;;  %v3472_v9 = vld [vmem:[%s3779_s15 + $0x8] sm:$0xff]   ;;  %v3473_v10 = vld [vmem:[%s3779_s15 + $0x10] sm:$0xff]   ;;  %s3583_s28 = scalar_lea.vmem %s4278_s19, 1024  ;;  %s3650_s16 = smov [#allocation2]  }
  0x1c   : > { %3171 = vmatprep.mubr.bf16.mxu0 %v3471_v4  ;;  %v3474_v11 = vld [vmem:[%s3779_s15 + $0x18] sm:$0xff]   ;;  %v3475_v12 = vld [vmem:[%s3779_s15 + $0x20] sm:$0xff]   ;;  %v3476_v13 = vld [vmem:[%s3779_s15 + $0x28] sm:$0xff]   ;;  %3192 = vmatpush3.bf16.msra.mxu1 %v3481_v18  ;;  %p3584_p11 = scmp.ne.s32.totalorder %s4278_s19, %s3583_s28 }
  0x1d   : > { %v3477_v14 = vld [vmem:[%s3779_s15 + $0x30] sm:$0xff]   ;;  %v3478_v15 = vld [vmem:[%s3779_s15 + $0x38] sm:$0xff]   ;;  %3193 = vmatprep.subr.bf16.mxu1 %v3482_v19  ;;  %s4282_s15 = scalar_lea.sflag [#allocation3], %s406_s29 }
  0x1e   : > { %3162 = vmatpush3.bf16.msra.mxu0 %v3466_v3  ;;  %p3585_p12 = pnand %p3584_p11, %p3756_p5 }
  0x1f   : > { %3163 = vmatprep.subr.bf16.mxu0 %v3467_v5 }
  0x20   : > { %3194 = vmatpush3.bf16.msra.mxu1 %v3482_v19  ;;  %p3586_p13 = pneg %p3585_p12 }
  0x21   : > { %3195 = vmatprep.subr.bf16.mxu1 %v3483_v20 }
  0x22   : > { %3164 = vmatpush3.bf16.msra.mxu0 %v3467_v5 }
  0x23   : > { %3165 = vmatprep.subr.bf16.mxu0 %v3468_v6 }
  0x24   : > { %3196 = vmatpush3.bf16.msra.mxu1 %v3483_v20 }
  0x25   : > { %3197 = vmatprep.subr.bf16.mxu1 %v3484_v21 }
  0x26   : > { %3166 = vmatpush3.bf16.msra.mxu0 %v3468_v6 }
  0x27   : > { %3167 = vmatprep.subr.bf16.mxu0 %v3469_v7 }
  0x28   : > { %3198 = vmatpush3.bf16.msra.mxu1 %v3484_v21 }
  0x29   : > { %3199 = vmatprep.subr.bf16.mxu1 %v3485_v22 }
  0x2a   : > { %3168 = vmatpush3.bf16.msra.mxu0 %v3469_v7 }
  0x2b   : > { %3169 = vmatprep.subr.bf16.mxu0 %v3470_v8 }
  0x2c   : > { %3200 = vmatpush3.bf16.msra.mxu1 %v3485_v22 }
  0x2d   : > { %3201 = vmatprep.subr.bf16.mxu1 %v3486_v23 }
  0x2e   : > { %3170 = vmatpush3.bf16.msra.mxu0 %v3470_v8 }
  0x30   : > { %3202 = vmatpush3.bf16.msra.mxu1 %v3486_v23 }
  0x31   : > { %3172 = vmatmul.mubr.bf16.vlgmr.msra.gmra.mrb[0].mxu0 %v3472_v9 }
  0x32   : > { %3175 = vmatprep.mubr.bf16.mxu0 %v3473_v10 }
  0x39   : > { %3176 = vmatmul.mubr.bf16.gmra.mrb[4].mxu0 %v3474_v11 }
  0x3a   : > { %3179 = vmatprep.mubr.bf16.mxu0 %v3475_v12 }
  0x41   : > { %3180 = vmatmul.mubr.bf16.gmra.mrb[8].mxu0 %v3476_v13 }
  0x42   : > { %3183 = vmatprep.mubr.bf16.mxu0 %v3477_v14 }
  0x49   : > { %3184 = vmatmul.mubr.bf16.gmra.mrb[12].mxu0 %v3478_v15 }
 0x104   : > { %v3173_v25 = vpop.f32.mrb[0].mxu0 }
 0x105   : > { %v3834_v26 = vadd.f32 %v3173_v25, %v3831_v24  ;;  %v601_v27 = vpop.f32.mrb[1].mxu0 }
 0x106   : > { %v3837_v28 = vadd.f32 %v3831_v24, %v601_v27  ;;  %v3174_v29 = vpop.f32.mrb[2].mxu0 }
 0x107   : > { %v666_v30 = vmul.f32 %v3834_v26, %v3834_v26  ;;  %v3842_v31 = vadd.f32 %v3174_v29, %v3831_v24  ;;  %v604_v32 = vpop.f32.mrb[3].mxu0 }
 0x108   : > { %v664_v33 = vmul.f32 %v3837_v28, %v3837_v28  ;;  %v3847_v34 = vadd.f32 %v3831_v24, %v604_v32 }
 0x109   : > { %v682_v35 = vmul.f32 %v666_v30, %v3834_v26  ;;  %v667_v36 = vmul.f32 %v3842_v31, %v3842_v31 }
 0x10a   : > { %v680_v37 = vmul.f32 %v664_v33, %v3837_v28  ;;  %v665_v38 = vmul.f32 %v3847_v34, %v3847_v34 }
 0x10b   : > { %v698_v39 = vmul.f32 0.044715, %v682_v35  ;;  %v683_v40 = vmul.f32 %v667_v36, %v3842_v31 }
 0x10c   : > { %v696_v41 = vmul.f32 0.044715, %v680_v37  ;;  %v681_v42 = vmul.f32 %v665_v38, %v3847_v34  ;;  %v3177_v43 = vpop.f32.mrb[4].mxu0 }
 0x10d   : > { %v714_v44 = vadd.f32 %v698_v39, %v3834_v26  ;;  %v699_v45 = vmul.f32 0.044715, %v683_v40  ;;  %v3859_v46 = vadd.f32 %v3177_v43, %v3831_v24  ;;  %v617_v47 = vpop.f32.mrb[5].mxu0 }
 0x10e   : > { %v697_v48 = vmul.f32 0.044715, %v681_v42  ;;  %v3862_v49 = vadd.f32 %v3831_v24, %v617_v47  ;;  %v3178_v50 = vpop.f32.mrb[6].mxu0  ;;  %v712_v51 = vadd.f32 %v696_v41, %v3837_v28 }
 0x10f   : > { %v730_v52 = vmul.f32 0.7978846, %v714_v44  ;;  %v715_v53 = vadd.f32 %v699_v45, %v3842_v31  ;;  %v670_v54 = vmul.f32 %v3859_v46, %v3859_v46  ;;  %v3869_v55 = vadd.f32 %v3178_v50, %v3831_v24  ;;  %v620_v56 = vpop.f32.mrb[7].mxu0 }
 0x110   : > { %v668_v57 = vmul.f32 %v3862_v49, %v3862_v49  ;;  %v3874_v58 = vadd.f32 %v3831_v24, %v620_v56  ;;  %v713_v59 = vadd.f32 %v697_v48, %v3847_v34  ;;  %v728_v60 = vmul.f32 0.7978846, %v712_v51 }
 0x111   : > { %3503 = vtanh.f32 %v730_v52  ;;  %v731_v61 = vmul.f32 0.7978846, %v715_v53  ;;  %v686_v62 = vmul.f32 %v670_v54, %v3859_v46  ;;  %v671_v63 = vmul.f32 %v3869_v55, %v3869_v55 }
 0x112   : > { %v684_v0 = vmul.f32 %v668_v57, %v3862_v49  ;;  %v669_v1 = vmul.f32 %v3874_v58, %v3874_v58  ;;  %v729_v2 = vmul.f32 0.7978846, %v713_v59  ;;  %3505 = vtanh.f32 %v728_v60 }
 0x113   : > { %3507 = vtanh.f32 %v731_v61  ;;  %v702_v3 = vmul.f32 0.044715, %v686_v62  ;;  %v687_v4 = vmul.f32 %v671_v63, %v3869_v55 }
 0x114   : > { %v700_v5 = vmul.f32 0.044715, %v684_v0  ;;  %v685_v6 = vmul.f32 %v669_v1, %v3874_v58  ;;  %v3181_v7 = vpop.f32.mrb[8].mxu0  ;;  %3509 = vtanh.f32 %v729_v2 }
 0x115   : > { %v718_v8 = vadd.f32 %v702_v3, %v3859_v46  ;;  %v703_v9 = vmul.f32 0.044715, %v687_v4  ;;  %v3887_v10 = vadd.f32 %v3181_v7, %v3831_v24  ;;  %v633_v11 = vpop.f32.mrb[9].mxu0 }
 0x116   : > { %v716_v12 = vadd.f32 %v700_v5, %v3862_v49  ;;  %v701_v13 = vmul.f32 0.044715, %v685_v6  ;;  %v3891_v14 = vadd.f32 %v3831_v24, %v633_v11  ;;  %v3182_v15 = vpop.f32.mrb[10].mxu0 }
 0x117   : > { %v734_v16 = vmul.f32 0.7978846, %v718_v8  ;;  %v719_v17 = vadd.f32 %v703_v9, %v3869_v55  ;;  %v674_v18 = vmul.f32 %v3887_v10, %v3887_v10  ;;  %v3897_v19 = vadd.f32 %v3182_v15, %v3831_v24  ;;  %v636_v20 = vpop.f32.mrb[11].mxu0 }
 0x118   : > { %v732_v21 = vmul.f32 0.7978846, %v716_v12  ;;  %v717_v22 = vadd.f32 %v701_v13, %v3874_v58  ;;  %v672_v23 = vmul.f32 %v3891_v14, %v3891_v14  ;;  %v3903_v25 = vadd.f32 %v3831_v24, %v636_v20 }
 0x119   : > { %3511 = vtanh.f32 %v734_v16  ;;  %v735_v27 = vmul.f32 0.7978846, %v719_v17  ;;  %v690_v29 = vmul.f32 %v674_v18, %v3887_v10  ;;  %v675_v30 = vmul.f32 %v3897_v19, %v3897_v19 }
 0x11a   : > { %3513 = vtanh.f32 %v732_v21  ;;  %v733_v32 = vmul.f32 0.7978846, %v717_v22  ;;  %v688_v33 = vmul.f32 %v672_v23, %v3891_v14  ;;  %v673_v35 = vmul.f32 %v3903_v25, %v3903_v25 }
 0x11b   : > { %v3504_v36 = vpop.eup %3503  ;;  %3515 = vtanh.f32 %v735_v27  ;;  %v706_v37 = vmul.f32 0.044715, %v690_v29  ;;  %v691_v38 = vmul.f32 %v675_v30, %v3897_v19 }
 0x11c   : > { %v3506_v39 = vpop.eup %3505  ;;  %3517 = vtanh.f32 %v733_v32  ;;  %v704_v40 = vmul.f32 0.044715, %v688_v33  ;;  %v689_v41 = vmul.f32 %v673_v35, %v3903_v25  ;;  %v3185_v42 = vpop.f32.mrb[12].mxu0  ;;  %v762_v43 = vadd.f32 1.0, %v3504_v36 }
 0x11d   : > { %v3508_v44 = vpop.eup %3507  ;;  %v722_v45 = vadd.f32 %v706_v37, %v3887_v10  ;;  %v707_v47 = vmul.f32 0.044715, %v691_v38  ;;  %v3915_v48 = vadd.f32 %v3185_v42, %v3831_v24  ;;  %v649_v50 = vpop.f32.mrb[13].mxu0  ;;  %v760_v51 = vadd.f32 1.0, %v3506_v39 }
 0x11e   : > { %v720_v52 = vadd.f32 %v704_v40, %v3891_v14  ;;  %v705_v53 = vmul.f32 0.044715, %v689_v41  ;;  %v3919_v54 = vadd.f32 %v3831_v24, %v649_v50  ;;  %v3186_v56 = vpop.f32.mrb[14].mxu0  ;;  %v763_v57 = vadd.f32 1.0, %v3508_v44  ;;  %v3510_v0 = vpop.eup %3509 }
 0x11f   : > { %v738_v59 = vmul.f32 0.7978846, %v722_v45  ;;  %v723_v60 = vadd.f32 %v707_v47, %v3897_v19  ;;  %v678_v61 = vmul.f32 %v3915_v48, %v3915_v48  ;;  %v3925_v62 = vadd.f32 %v3186_v56, %v3831_v24  ;;  %v652_v63 = vpop.f32.mrb[15].mxu0 }
 0x120   : > { %v736_v1 = vmul.f32 0.7978846, %v720_v52  ;;  %v721_v2 = vadd.f32 %v705_v53, %v3903_v25  ;;  %v676_v3 = vmul.f32 %v3919_v54, %v3919_v54  ;;  %v3931_v4 = vadd.f32 %v3831_v24, %v652_v63 }
 0x121   : > { %3519 = vtanh.f32 %v738_v59  ;;  %v739_v5 = vmul.f32 0.7978846, %v723_v60  ;;  %v694_v6 = vmul.f32 %v678_v61, %v3915_v48  ;;  %v679_v7 = vmul.f32 %v3925_v62, %v3925_v62 }
 0x122   : > { %3521 = vtanh.f32 %v736_v1  ;;  %v737_v8 = vmul.f32 0.7978846, %v721_v2  ;;  %v692_v9 = vmul.f32 %v676_v3, %v3919_v54  ;;  %v677_v11 = vmul.f32 %v3931_v4, %v3931_v4 }
 0x123   : > { %v3512_v12 = vpop.eup %3511  ;;  %3523 = vtanh.f32 %v739_v5  ;;  %v710_v13 = vmul.f32 0.044715, %v694_v6  ;;  %v695_v24 = vmul.f32 %v679_v7, %v3925_v62  ;;  %v761_v15 = vadd.f32 1.0, %v3510_v0 }
 0x124   : > { %v3514_v16 = vpop.eup %3513  ;;  %3525 = vtanh.f32 %v737_v8  ;;  %v708_v17 = vmul.f32 0.044715, %v692_v9  ;;  %v693_v18 = vmul.f32 %v677_v11, %v3931_v4  ;;  %v776_v20 = vmul.f32 0.5, %v760_v51 }
 0x125   : > { %v3516_v21 = vpop.eup %3515  ;;  %v726_v22 = vadd.f32 %v710_v13, %v3915_v48  ;;  %v711_v23 = vmul.f32 0.044715, %v695_v24  ;;  %v777_v27 = vmul.f32 0.5, %v761_v15  ;;  %v778_v29 = vmul.f32 0.5, %v762_v43 }
 0x126   : > { %v3518_v30 = vpop.eup %3517  ;;  %v724_v32 = vadd.f32 %v708_v17, %v3919_v54  ;;  %v709_v33 = vmul.f32 0.044715, %v693_v18  ;;  %v792_v35 = vmul.f32 %v776_v20, %v3837_v28  ;;  %v779_v36 = vmul.f32 0.5, %v763_v57 }
 0x127   : > { %v742_v37 = vmul.f32 0.7978846, %v726_v22  ;;  %v727_v38 = vadd.f32 %v711_v23, %v3925_v62  ;;  %v793_v39 = vmul.f32 %v777_v27, %v3847_v34  ;;  %v794_v40 = vmul.f32 %v778_v29, %v3834_v26 }
 0x128   : > { %v740_v41 = vmul.f32 0.7978846, %v724_v32  ;;  %v725_v42 = vadd.f32 %v709_v33, %v3931_v4  ;;  %v795_v44 = vmul.f32 %v779_v36, %v3842_v31  ;;  %v764_v43 = vadd.f32 1.0, %v3514_v16 }
 0x129   : > { %3527 = vtanh.f32 %v742_v37  ;;  %v743_v45 = vmul.f32 0.7978846, %v727_v38  ;;  %v808_v47 = vpack.c.bf16 %v793_v39, %v792_v35  ;;  %v765_v50 = vadd.f32 1.0, %v3518_v30  ;;  %v3487_v38 = vld [vmem:[%s4368_s7] sm:$0xff]   ;;  %v3492_v39 = vld [vmem:[%s4368_s7 + $0x28] sm:$0xff]  }
 0x12a   : > { %3529 = vtanh.f32 %v740_v41  ;;  %v741_v28 = vmul.f32 0.7978846, %v725_v42  ;;  %v809_v51 = vpack.c.bf16 %v795_v44, %v794_v40  ;;  %v780_v52 = vmul.f32 0.5, %v764_v43  ;;  %3219 = vmatprep.subr.bf16.mxu0 %v3487_v38  ;;  %v3493_v40 = vld [vmem:[%s4368_s7 + $0x30] sm:$0xff]   ;;  %v3494_v41 = vld [vmem:[%s4368_s7 + $0x38] sm:$0xff]  }
 0x12b   : > { %v3520_v53 = vpop.eup %3519  ;;  %3531 = vtanh.f32 %v743_v45  ;;  %3203 = vmatprep.mubr.bf16.mxu1 %v808_v47  ;;  %v781_v34 = vmul.f32 0.5, %v765_v50  ;;  %v766_v56 = vadd.f32 1.0, %v3512_v12  ;;  %v767_v26 = vadd.f32 1.0, %v3516_v21  ;;  %3220 = vmatpush3.bf16.msra.mxu0 %v3487_v38  ;;  %v3988_v42 = vld [vmem:[%s4367_s6] ss:$0 sm:$0xff] }
 0x12c   : > { %v3522_v57 = vpop.eup %3521  ;;  %3533 = vtanh.f32 %v741_v28  ;;  %3204 = vmatmul.mubr.bf16.vlgmr.msra.gmra.mrb[0].mxu1 %v809_v51  ;;  %v796_v31 = vmul.f32 %v780_v52, %v3862_v49  ;;  %v770_v59 = vadd.f32 1.0, %v3520_v53 }
 0x12d   : > { %v3524_v60 = vpop.eup %3523  ;;  %v797_v61 = vmul.f32 %v781_v34, %v3874_v58  ;;  %v782_v63 = vmul.f32 0.5, %v766_v56  ;;  %v783_v0 = vmul.f32 0.5, %v767_v26  ;;  %v768_v1 = vadd.f32 1.0, %v3522_v57 }
 0x12e   : > { %v3526_v2 = vpop.eup %3525  ;;  %v771_v3 = vadd.f32 1.0, %v3524_v60  ;;  %v786_v5 = vmul.f32 0.5, %v770_v59 }
 0x12f   : > { %v810_v6 = vpack.c.bf16 %v797_v61, %v796_v31  ;;  %v798_v7 = vmul.f32 %v782_v63, %v3859_v46  ;;  %v799_v8 = vmul.f32 %v783_v0, %v3869_v55  ;;  %v769_v9 = vadd.f32 1.0, %v3526_v2 }
 0x130   : > { %v784_v11 = vmul.f32 0.5, %v768_v1  ;;  %v787_v12 = vmul.f32 0.5, %v771_v3  ;;  %v802_v24 = vmul.f32 %v786_v5, %v3887_v10 }
 0x131   : > { %3207 = vmatprep.mubr.bf16.mxu1 %v810_v6  ;;  %v811_v49 = vpack.c.bf16 %v799_v8, %v798_v7  ;;  %v785_v13 = vmul.f32 0.5, %v769_v9 }
 0x132   : > { %v803_v58 = vmul.f32 %v787_v12, %v3897_v19  ;;  %v800_v16 = vmul.f32 %v784_v11, %v3891_v14 }
 0x133   : > { %v3528_v15 = vpop.eup %3527  ;;  %v801_v17 = vmul.f32 %v785_v13, %v3903_v25 }
 0x134   : > { %v3530_v18 = vpop.eup %3529  ;;  %3208 = vmatmul.mubr.bf16.gmra.mrb[4].mxu1 %v811_v49  ;;  %v813_v46 = vpack.c.bf16 %v803_v58, %v802_v24  ;;  %v774_v20 = vadd.f32 1.0, %v3528_v15 }
 0x135   : > { %v3532_v55 = vpop.eup %3531  ;;  %v812_v21 = vpack.c.bf16 %v801_v17, %v800_v16  ;;  %v772_v22 = vadd.f32 1.0, %v3530_v18 }
 0x136   : > { %v3534_v23 = vpop.eup %3533  ;;  %v775_v27 = vadd.f32 1.0, %v3532_v55  ;;  %v790_v29 = vmul.f32 0.5, %v774_v20 }
 0x137   : > { %3211 = vmatprep.mubr.bf16.mxu1 %v812_v21  ;;  %v773_v30 = vadd.f32 1.0, %v3534_v23  ;;  %v788_v10 = vmul.f32 0.5, %v772_v22 }
 0x138   : > { %v791_v32 = vmul.f32 0.5, %v775_v27  ;;  %v806_v33 = vmul.f32 %v790_v29, %v3915_v48  ;;  %v3488_v48 = vld [vmem:[%s4368_s7 + $0x8] sm:$0xff]  }
 0x139   : > { %v789_v19 = vmul.f32 0.5, %v773_v30  ;;  %v804_v25 = vmul.f32 %v788_v10, %v3919_v54  ;;  %3221 = vmatprep.subr.bf16.mxu0 %v3488_v48  ;;  %v3489_v54 = vld [vmem:[%s4368_s7 + $0x10] sm:$0xff]  }
 0x13a   : > { %v807_v14 = vmul.f32 %v791_v32, %v3925_v62  ;;  %3222 = vmatpush3.bf16.msra.mxu0 %v3488_v48  ;;  %v3490_v62 = vld [vmem:[%s4368_s7 + $0x18] sm:$0xff]  }
 0x13b   : > { %v805_v35 = vmul.f32 %v789_v19, %v3931_v4  ;;  %3223 = vmatprep.subr.bf16.mxu0 %v3489_v54  ;;  %v3491_v4 = vld [vmem:[%s4368_s7 + $0x20] sm:$0xff]  }
 0x13c   : > { %3212 = vmatmul.mubr.bf16.gmra.mrb[8].mxu1 %v813_v46  ;;  %v815_v36 = vpack.c.bf16 %v807_v14, %v806_v33 }
 0x13d   : > { %v814_v37 = vpack.c.bf16 %v805_v35, %v804_v25 }
 0x13e   : > { %3224 = vmatpush3.bf16.msra.mxu0 %v3489_v54 }
 0x13f   : > { %3215 = vmatprep.mubr.bf16.mxu1 %v814_v37  ;;  %3225 = vmatprep.subr.bf16.mxu0 %v3490_v62 }
 0x142   : > { %3226 = vmatpush3.bf16.msra.mxu0 %v3490_v62 }
 0x143   : > { %3227 = vmatprep.subr.bf16.mxu0 %v3491_v4 }
 0x144   : > { %3216 = vmatmul.mubr.bf16.gmra.mrb[12].mxu1 %v815_v36 }
 0x146   : > { %3228 = vmatpush3.bf16.msra.mxu0 %v3491_v4 }
 0x147   : > { %3229 = vmatprep.subr.bf16.mxu0 %v3492_v39 }
 0x14a   : > { %3230 = vmatpush3.bf16.msra.mxu0 %v3492_v39 }
 0x14b   : > { %3231 = vmatprep.subr.bf16.mxu0 %v3493_v40 }
 0x14e   : > { %3232 = vmatpush3.bf16.msra.mxu0 %v3493_v40 }
 0x14f   : > { %3233 = vmatprep.subr.bf16.mxu0 %v3494_v41 }
 0x152   : > { %3234 = vmatpush3.bf16.msra.mxu0 %v3494_v41 }
 0x1ff   : > { %v3205_v44 = vpop.f32.mrb[0].mxu1 }
 0x200   : > { %v3991_v43 = vadd.f32 %v3205_v44, %v3988_v42  ;;  %v921_v45 = vpop.f32.mrb[1].mxu1 }
 0x201   : > { %v3994_v47 = vadd.f32 %v3988_v42, %v921_v45  ;;  %v3206_v50 = vpop.f32.mrb[2].mxu1 }
 0x202   : > { %v986_v28 = vmul.f32 %v3991_v43, %v3991_v43  ;;  %v3999_v51 = vadd.f32 %v3206_v50, %v3988_v42  ;;  %v924_v52 = vpop.f32.mrb[3].mxu1 }
 0x203   : > { %v984_v53 = vmul.f32 %v3994_v47, %v3994_v47  ;;  %v4004_v34 = vadd.f32 %v3988_v42, %v924_v52 }
 0x204   : > { %v1002_v56 = vmul.f32 %v986_v28, %v3991_v43  ;;  %v987_v26 = vmul.f32 %v3999_v51, %v3999_v51 }
 0x205   : > { %v1000_v57 = vmul.f32 %v984_v53, %v3994_v47  ;;  %v985_v31 = vmul.f32 %v4004_v34, %v4004_v34 }
 0x206   : > { %v1018_v59 = vmul.f32 0.044715, %v1002_v56  ;;  %v1003_v60 = vmul.f32 %v987_v26, %v3999_v51 }
 0x207   : > { %v1016_v61 = vmul.f32 0.044715, %v1000_v57  ;;  %v1001_v63 = vmul.f32 %v985_v31, %v4004_v34  ;;  %v3209_v0 = vpop.f32.mrb[4].mxu1 }
 0x208   : > { %v1034_v1 = vadd.f32 %v1018_v59, %v3991_v43  ;;  %v1019_v2 = vmul.f32 0.044715, %v1003_v60  ;;  %v4016_v3 = vadd.f32 %v3209_v0, %v3988_v42  ;;  %v937_v5 = vpop.f32.mrb[5].mxu1 }
 0x209   : > { %v1032_v6 = vadd.f32 %v1016_v61, %v3994_v47  ;;  %v1017_v7 = vmul.f32 0.044715, %v1001_v63  ;;  %v4020_v8 = vadd.f32 %v3988_v42, %v937_v5  ;;  %v3210_v9 = vpop.f32.mrb[6].mxu1 }
 0x20a   : > { %v1050_v11 = vmul.f32 0.7978846, %v1034_v1  ;;  %v1035_v12 = vadd.f32 %v1019_v2, %v3999_v51  ;;  %v990_v49 = vmul.f32 %v4016_v3, %v4016_v3  ;;  %v4026_v13 = vadd.f32 %v3210_v9, %v3988_v42  ;;  %v940_v24 = vpop.f32.mrb[7].mxu1 }
 0x20b   : > { %v1048_v58 = vmul.f32 0.7978846, %v1032_v6  ;;  %v1033_v15 = vadd.f32 %v1017_v7, %v4004_v34  ;;  %v988_v16 = vmul.f32 %v4020_v8, %v4020_v8  ;;  %v4032_v17 = vadd.f32 %v3988_v42, %v940_v24 }
 0x20c   : > { %3535 = vtanh.f32 %v1050_v11  ;;  %v1051_v18 = vmul.f32 0.7978846, %v1035_v12  ;;  %v1006_v46 = vmul.f32 %v990_v49, %v4016_v3  ;;  %v991_v20 = vmul.f32 %v4026_v13, %v4026_v13 }
 0x20d   : > { %3537 = vtanh.f32 %v1048_v58  ;;  %v1049_v55 = vmul.f32 0.7978846, %v1033_v15  ;;  %v1004_v21 = vmul.f32 %v988_v16, %v4020_v8  ;;  %v989_v22 = vmul.f32 %v4032_v17, %v4032_v17 }
 0x20e   : > { %3539 = vtanh.f32 %v1051_v18  ;;  %v1022_v23 = vmul.f32 0.044715, %v1006_v46  ;;  %v1007_v27 = vmul.f32 %v991_v20, %v4026_v13 }
 0x20f   : > { %v1020_v29 = vmul.f32 0.044715, %v1004_v21  ;;  %v1005_v30 = vmul.f32 %v989_v22, %v4032_v17  ;;  %v3213_v10 = vpop.f32.mrb[8].mxu1  ;;  %3541 = vtanh.f32 %v1049_v55 }
 0x210   : > { %v1038_v32 = vadd.f32 %v1022_v23, %v4016_v3  ;;  %v1023_v19 = vmul.f32 0.044715, %v1007_v27  ;;  %v4044_v33 = vadd.f32 %v3213_v10, %v3988_v42  ;;  %v953_v14 = vpop.f32.mrb[9].mxu1 }
 0x211   : > { %v1036_v25 = vadd.f32 %v1020_v29, %v4020_v8  ;;  %v1021_v35 = vmul.f32 0.044715, %v1005_v30  ;;  %v4048_v36 = vadd.f32 %v3988_v42, %v953_v14  ;;  %v3214_v37 = vpop.f32.mrb[10].mxu1 }
 0x212   : > { %v1054_v38 = vmul.f32 0.7978846, %v1038_v32  ;;  %v1039_v48 = vadd.f32 %v1023_v19, %v4026_v13  ;;  %v994_v54 = vmul.f32 %v4044_v33, %v4044_v33  ;;  %v4054_v62 = vadd.f32 %v3214_v37, %v3988_v42  ;;  %v956_v4 = vpop.f32.mrb[11].mxu1 }
 0x213   : > { %v1052_v39 = vmul.f32 0.7978846, %v1036_v25  ;;  %v1037_v40 = vadd.f32 %v1021_v35, %v4032_v17  ;;  %v992_v41 = vmul.f32 %v4048_v36, %v4048_v36  ;;  %v4060_v44 = vadd.f32 %v3988_v42, %v956_v4 }
 0x214   : > { %3543 = vtanh.f32 %v1054_v38  ;;  %v1055_v45 = vmul.f32 0.7978846, %v1039_v48  ;;  %v1010_v50 = vmul.f32 %v994_v54, %v4044_v33  ;;  %v995_v28 = vmul.f32 %v4054_v62, %v4054_v62 }
 0x215   : > { %3545 = vtanh.f32 %v1052_v39  ;;  %v1053_v52 = vmul.f32 0.7978846, %v1037_v40  ;;  %v1008_v53 = vmul.f32 %v992_v41, %v4048_v36  ;;  %v993_v56 = vmul.f32 %v4060_v44, %v4060_v44 }
 0x216   : > { %v3536_v26 = vpop.eup %3535  ;;  %3547 = vtanh.f32 %v1055_v45  ;;  %v1026_v57 = vmul.f32 0.044715, %v1010_v50  ;;  %v1011_v31 = vmul.f32 %v995_v28, %v4054_v62 }
 0x217   : > { %v3538_v59 = vpop.eup %3537  ;;  %v1082_v60 = vadd.f32 1.0, %v3536_v26  ;;  %3549 = vtanh.f32 %v1053_v52  ;;  %v1024_v61 = vmul.f32 0.044715, %v1008_v53  ;;  %v1009_v63 = vmul.f32 %v993_v56, %v4060_v44  ;;  %v3217_v0 = vpop.f32.mrb[12].mxu1 }
 0x218   : > { %v3540_v1 = vpop.eup %3539  ;;  %v1042_v2 = vadd.f32 %v1026_v57, %v4044_v33  ;;  %v1027_v5 = vmul.f32 0.044715, %v1011_v31  ;;  %v4072_v6 = vadd.f32 %v3217_v0, %v3988_v42  ;;  %v969_v7 = vpop.f32.mrb[13].mxu1  ;;  %v1080_v9 = vadd.f32 1.0, %v3538_v59 }
 0x219   : > { %v1098_v11 = vmul.f32 0.5, %v1082_v60  ;;  %v1083_v12 = vadd.f32 1.0, %v3540_v1  ;;  %v1040_v49 = vadd.f32 %v1024_v61, %v4048_v36  ;;  %v1025_v24 = vmul.f32 0.044715, %v1009_v63  ;;  %v3218_v58 = vpop.f32.mrb[14].mxu1  ;;  %v3542_v55 = vpop.eup %3541 }
 0x21a   : > { %v1058_v15 = vmul.f32 0.7978846, %v1042_v2  ;;  %v1043_v16 = vadd.f32 %v1027_v5, %v4054_v62  ;;  %v998_v18 = vmul.f32 %v4072_v6, %v4072_v6  ;;  %v4079_v46 = vadd.f32 %v3988_v42, %v969_v7  ;;  %v972_v20 = vpop.f32.mrb[15].mxu1 }
 0x21b   : > { %v1114_v21 = vmul.f32 %v1098_v11, %v3991_v43  ;;  %v1099_v22 = vmul.f32 0.5, %v1083_v12  ;;  %v1056_v23 = vmul.f32 0.7978846, %v1040_v49  ;;  %v1041_v27 = vadd.f32 %v1025_v24, %v4060_v44 }
 0x21c   : > { %3551 = vtanh.f32 %v1058_v15  ;;  %v1059_v29 = vmul.f32 0.7978846, %v1043_v16  ;;  %v1014_v30 = vmul.f32 %v998_v18, %v4072_v6  ;;  %v996_v10 = vmul.f32 %v4079_v46, %v4079_v46 }
 0x21d   : > { %v1115_v32 = vmul.f32 %v1099_v22, %v3999_v51  ;;  %3553 = vtanh.f32 %v1056_v23  ;;  %v1057_v19 = vmul.f32 0.7978846, %v1041_v27  ;;  %v4088_v14 = vadd.f32 %v3218_v58, %v3988_v42 }
 0x21e   : > { %v3544_v25 = vpop.eup %3543  ;;  %3555 = vtanh.f32 %v1059_v29  ;;  %v1030_v43 = vmul.f32 0.044715, %v1014_v30  ;;  %v1012_v35 = vmul.f32 %v996_v10, %v4079_v46  ;;  %v4092_v37 = vadd.f32 %v3988_v42, %v972_v20 }
 0x21f   : > { %v3546_v38 = vpop.eup %3545  ;;  %v1129_v48 = vpack.c.bf16 %v1115_v32, %v1114_v21  ;;  %3557 = vtanh.f32 %v1057_v19  ;;  %v999_v54 = vmul.f32 %v4088_v14, %v4088_v14  ;;  %v1081_v51 = vadd.f32 1.0, %v3542_v55 }
 0x220   : > { %v3548_v4 = vpop.eup %3547  ;;  %v1046_v39 = vadd.f32 %v1030_v43, %v4072_v6  ;;  %v1028_v40 = vmul.f32 0.044715, %v1012_v35  ;;  %v997_v41 = vmul.f32 %v4092_v37, %v4092_v37  ;;  %v1096_v45 = vmul.f32 0.5, %v1080_v9 }
 0x221   : > { %v3550_v50 = vpop.eup %3549  ;;  %v1015_v28 = vmul.f32 %v999_v54, %v4088_v14  ;;  %v1097_v42 = vmul.f32 0.5, %v1081_v51  ;;  %v1084_v52 = vadd.f32 1.0, %v3546_v38  ;;  %v1086_v53 = vadd.f32 1.0, %v3544_v25 }
 0x222   : > { %v1062_v56 = vmul.f32 0.7978846, %v1046_v39  ;;  %v1044_v26 = vadd.f32 %v1028_v40, %v4079_v46  ;;  %v1013_v57 = vmul.f32 %v997_v41, %v4092_v37  ;;  %v1112_v31 = vmul.f32 %v1096_v45, %v3994_v47 }
 0x223   : > { %v1031_v59 = vmul.f32 0.044715, %v1015_v28  ;;  %v1113_v60 = vmul.f32 %v1097_v42, %v4004_v34  ;;  %v1085_v61 = vadd.f32 1.0, %v3550_v50  ;;  %v1100_v63 = vmul.f32 0.5, %v1084_v52 }
 0x224   : > { %3559 = vtanh.f32 %v1062_v56  ;;  %v1060_v0 = vmul.f32 0.7978846, %v1044_v26  ;;  %v1029_v1 = vmul.f32 0.044715, %v1013_v57  ;;  %v1087_v2 = vadd.f32 1.0, %v3548_v4 }
 0x225   : > { %v1047_v5 = vadd.f32 %v1031_v59, %v4088_v14  ;;  %v1128_v7 = vpack.c.bf16 %v1113_v60, %v1112_v31  ;;  %v1101_v9 = vmul.f32 0.5, %v1085_v61  ;;  %v1102_v49 = vmul.f32 0.5, %v1086_v53 }
 0x226   : > { %v3552_v11 = vpop.eup %3551  ;;  %3561 = vtanh.f32 %v1060_v0  ;;  %v1045_v12 = vadd.f32 %v1029_v1, %v4092_v37  ;;  %v1103_v24 = vmul.f32 0.5, %v1087_v2  ;;  %v1116_v34 = vmul.f32 %v1100_v63, %v4020_v8 }
 0x227   : > { %v3554_v47 = vpop.eup %3553  ;;  %v1063_v58 = vmul.f32 0.7978846, %v1047_v5  ;;  %3235 = vmatprep.mubr.bf16.mxu0 %v1128_v7  ;;  %v1117_v15 = vmul.f32 %v1101_v9, %v4032_v17  ;;  %v1090_v16 = vadd.f32 1.0, %v3552_v11  ;;  %v1118_v55 = vmul.f32 %v1102_v49, %v4016_v3  ;;  %v1304_v5 = vld [vmem:[%s4362_s1] sm:$0xff] }
 0x228   : > { %v3556_v18 = vpop.eup %3555  ;;  %v1061_v20 = vmul.f32 0.7978846, %v1045_v12  ;;  %3236 = vmatmul.mubr.bf16.vlgmr.msra.gmra.mrb[16].mxu0 %v1129_v48  ;;  %v1119_v21 = vmul.f32 %v1103_v24, %v4026_v13  ;;  %v1088_v22 = vadd.f32 1.0, %v3554_v47  ;;  %v3647_v26 = vmov 0.0|0.0  }
 0x229   : > { %v3558_v23 = vpop.eup %3557  ;;  %3563 = vtanh.f32 %v1063_v58  ;;  %v1130_v27 = vpack.c.bf16 %v1117_v15, %v1116_v34  ;;  %v1091_v29 = vadd.f32 1.0, %v3556_v18  ;;  %v1106_v30 = vmul.f32 0.5, %v1090_v16  ;;  %3395 = vmatprep.subr.bf16.mxu1 %v3647_v26 }
 0x22a   : > { %3565 = vtanh.f32 %v1061_v20  ;;  %v1131_v10 = vpack.c.bf16 %v1119_v21, %v1118_v55  ;;  %v1089_v32 = vadd.f32 1.0, %v3558_v23  ;;  %v1104_v8 = vmul.f32 0.5, %v1088_v22 }
 0x22b   : > { %3239 = vmatprep.mubr.bf16.mxu0 %v1130_v27  ;;  %v1107_v17 = vmul.f32 0.5, %v1091_v29  ;;  %v1122_v25 = vmul.f32 %v1106_v30, %v4044_v33  ;;  %v3649_v57 = vmov 0.0  }
 0x22c   : > { %v1105_v19 = vmul.f32 0.5, %v1089_v32  ;;  %v1120_v13 = vmul.f32 %v1104_v8, %v4048_v36  ;;  %3255 = vmatprep.mubr.msk.f32.mxu1 %vm3648_vm0, %v3649_v57 }
 0x22d   : > { %v1123_v43 = vmul.f32 %v1107_v17, %v4054_v62 }
 0x22e   : > { %v3560_v3 = vpop.eup %3559  ;;  %v1121_v35 = vmul.f32 %v1105_v19, %v4060_v44 }
 0x22f   : > { %v1133_v38 = vpack.c.bf16 %v1123_v43, %v1122_v25  ;;  %v1094_v51 = vadd.f32 1.0, %v3560_v3 }
 0x230   : > { %v3562_v48 = vpop.eup %3561  ;;  %3240 = vmatmul.mubr.bf16.gmra.mrb[20].mxu0 %v1131_v10  ;;  %v1132_v54 = vpack.c.bf16 %v1121_v35, %v1120_v13  ;;  %v3495_v35 = vld [vmem:[%s4370_s9] sm:$0xff]  }
 0x231   : > { %v1092_v4 = vadd.f32 1.0, %v3562_v48  ;;  %v1110_v45 = vmul.f32 0.5, %v1094_v51  ;;  %3307 = vmatprep.subr.bf16.mxu0 %v3495_v35  ;;  %v3497_v48 = vld [vmem:[%s4370_s9 + $0x10] sm:$0xff]   ;;  %v3499_v51 = vld [vmem:[%s4370_s9 + $0x20] sm:$0xff]  }
 0x232   : > { %3243 = vmatprep.mubr.bf16.mxu0 %v1132_v54  ;;  %3308 = vmatpush3.bf16.msra.mxu0 %v3495_v35  ;;  %v3498_v54 = vld [vmem:[%s4370_s9 + $0x18] sm:$0xff]  }
 0x233   : > { %v3564_v39 = vpop.eup %3563  ;;  %v1108_v33 = vmul.f32 0.5, %v1092_v4  ;;  %v1126_v36 = vmul.f32 %v1110_v45, %v4072_v6  ;;  %v2966_v6 = vld [vmem:[%s4369_s8] ss:$0 sm:$0xff]  ;;  %v3500_v4 = vld [vmem:[%s4370_s9 + $0x28] sm:$0xff]  }
 0x234   : > { %v3566_v40 = vpop.eup %3565  ;;  %v1095_v41 = vadd.f32 1.0, %v3564_v39  ;;  %v3501_v39 = vld [vmem:[%s4370_s9 + $0x30] sm:$0xff]  }
 0x235   : > { %v1093_v50 = vadd.f32 1.0, %v3566_v40  ;;  %v1124_v42 = vmul.f32 %v1108_v33, %v4079_v46  ;;  %v3502_v40 = vld [vmem:[%s4370_s9 + $0x38] sm:$0xff]  }
 0x236   : > { %v1111_v28 = vmul.f32 0.5, %v1095_v41 }
 0x237   : > { %v1109_v62 = vmul.f32 0.5, %v1093_v50 }
 0x238   : > { %3244 = vmatmul.mubr.bf16.gmra.mrb[24].mxu0 %v1133_v38  ;;  %v1127_v44 = vmul.f32 %v1111_v28, %v4088_v14  ;;  %v3496_v38 = vld [vmem:[%s4370_s9 + $0x8] sm:$0xff]  }
 0x239   : > { %v1125_v52 = vmul.f32 %v1109_v62, %v4092_v37  ;;  %3309 = vmatprep.subr.bf16.mxu0 %v3496_v38 }
 0x23a   : > { %v1135_v53 = vpack.c.bf16 %v1127_v44, %v1126_v36  ;;  %3310 = vmatpush3.bf16.msra.mxu0 %v3496_v38 }
 0x23b   : > { %v1134_v56 = vpack.c.bf16 %v1125_v52, %v1124_v42  ;;  %3311 = vmatprep.subr.bf16.mxu0 %v3497_v48 }
 0x23d   : > { %3247 = vmatprep.mubr.bf16.mxu0 %v1134_v56 }
 0x23e   : > { %3312 = vmatpush3.bf16.msra.mxu0 %v3497_v48 }
 0x23f   : > { %3313 = vmatprep.subr.bf16.mxu0 %v3498_v54 }
 0x240   : > { %3248 = vmatmul.mubr.bf16.gmra.mrb[28].mxu0 %v1135_v53 }
 0x242   : > { %3314 = vmatpush3.bf16.msra.mxu0 %v3498_v54 }
 0x243   : > { %3315 = vmatprep.subr.bf16.mxu0 %v3499_v51 }
 0x246   : > { %3316 = vmatpush3.bf16.msra.mxu0 %v3499_v51 }
 0x247   : > { %3317 = vmatprep.subr.bf16.mxu0 %v3500_v4 }
 0x24a   : > { %3318 = vmatpush3.bf16.msra.mxu0 %v3500_v4 }
 0x24b   : > { %3319 = vmatprep.subr.bf16.mxu0 %v3501_v39 }
 0x24e   : > { %3320 = vmatpush3.bf16.msra.mxu0 %v3501_v39 }
 0x24f   : > { %3321 = vmatprep.subr.bf16.mxu0 %v3502_v40 }
 0x252   : > { %3322 = vmatpush3.bf16.msra.mxu0 %v3502_v40 }
 0x2fb   : > { %v3237_v31 = vpop.f32.mrb[16].mxu0 }
 0x2fc   : > { %v1241_v46 = vpop.f32.mrb[17].mxu0  ;;  %v1250_v37 = vadd.f32 %v3237_v31, %v2966_v6 }
 0x2fd   : > { %v3238_v14 = vpop.f32.mrb[18].mxu0  ;;  %v1242_v61 = vadd.f32 %v2966_v6, %v1241_v46 }
 0x2fe   : > { %v1253_v59 = vadd.f32 %v3238_v14, %v2966_v6  ;;  %v1244_v60 = vpop.f32.mrb[19].mxu0 }
 0x2ff   : > { %v1245_v63 = vadd.f32 %v2966_v6, %v1244_v60 }
 0x300   : > { %v3399_v0 = vpack.c.bf16 %v1253_v59, %v1250_v37 }
 0x301   : > { %v3396_v1 = vpack.c.bf16 %v1245_v63, %v1242_v61 }
 0x303   : > { %v3241_v2 = vpop.f32.mrb[20].mxu0  ;;  %3397 = vmatpush3.bf16.msra.mxu1 %v3396_v1 }
 0x304   : > { %v1257_v7 = vpop.f32.mrb[21].mxu0  ;;  %3398 = vmatprep.subr.bf16.mxu1 %v3647_v26  ;;  %v1266_v11 = vadd.f32 %v3241_v2, %v2966_v6 }
 0x305   : > { %v3242_v9 = vpop.f32.mrb[22].mxu0  ;;  %v1258_v24 = vadd.f32 %v2966_v6, %v1257_v7 }
 0x306   : > { %v1269_v12 = vadd.f32 %v3242_v9, %v2966_v6  ;;  %v1260_v49 = vpop.f32.mrb[23].mxu0  ;;  %3256 = vmatmul.mubr.msk.f32.vlgmr.msra.gmra.mrb[16].mxu1 %vm1305_vm1, %v1304_v5 }
 0x307   : > { %v1261_v47 = vadd.f32 %v2966_v6, %v1260_v49  ;;  %3400 = vmatpush3.bf16.msra.mxu1 %v3399_v0  ;;  %3262 = vmatprep.mubr.msk.f32.mxu1 %vm3648_vm0, %v3649_v57 }
 0x308   : > { %v3405_v58 = vpack.c.bf16 %v1269_v12, %v1266_v11  ;;  %3401 = vmatprep.subr.bf16.mxu1 %v3647_v26 }
 0x309   : > { %v3402_v34 = vpack.c.bf16 %v1261_v47, %v1258_v24 }
 0x30a   : > { %3263 = vmatmul.mubr.msk.f32.vlgmr.msra.gmra.mrb[18].mxu1 %vm1305_vm1, %v1304_v5 }
 0x30b   : > { %v3245_v15 = vpop.f32.mrb[24].mxu0  ;;  %3403 = vmatpush3.bf16.msra.mxu1 %v3402_v34  ;;  %3269 = vmatprep.mubr.msk.f32.mxu1 %vm3648_vm0, %v3649_v57 }
 0x30c   : > { %v1273_v16 = vpop.f32.mrb[25].mxu0  ;;  %3404 = vmatprep.subr.bf16.mxu1 %v3647_v26  ;;  %v1282_v20 = vadd.f32 %v3245_v15, %v2966_v6 }
 0x30d   : > { %v3246_v18 = vpop.f32.mrb[26].mxu0  ;;  %v1274_v22 = vadd.f32 %v2966_v6, %v1273_v16 }
 0x30e   : > { %v1285_v55 = vadd.f32 %v3246_v18, %v2966_v6  ;;  %v1276_v21 = vpop.f32.mrb[27].mxu0  ;;  %3270 = vmatmul.mubr.msk.f32.vlgmr.msra.gmra.mrb[20].mxu1 %vm1305_vm1, %v1304_v5 }
 0x30f   : > { %v1277_v23 = vadd.f32 %v2966_v6, %v1276_v21  ;;  %3406 = vmatpush3.bf16.msra.mxu1 %v3405_v58  ;;  %3276 = vmatprep.mubr.msk.f32.mxu1 %vm3648_vm0, %v3649_v57 }
 0x310   : > { %v3411_v27 = vpack.c.bf16 %v1285_v55, %v1282_v20  ;;  %3407 = vmatprep.subr.bf16.mxu1 %v3647_v26 }
 0x311   : > { %v3408_v29 = vpack.c.bf16 %v1277_v23, %v1274_v22 }
 0x312   : > { %3277 = vmatmul.mubr.msk.f32.vlgmr.msra.gmra.mrb[22].mxu1 %vm1305_vm1, %v1304_v5 }
 0x313   : > { %v3249_v30 = vpop.f32.mrb[28].mxu0  ;;  %3409 = vmatpush3.bf16.msra.mxu1 %v3408_v29  ;;  %3283 = vmatprep.mubr.msk.f32.mxu1 %vm3648_vm0, %v3649_v57 }
 0x314   : > { %v1289_v10 = vpop.f32.mrb[29].mxu0  ;;  %3410 = vmatprep.subr.bf16.mxu1 %v3647_v26  ;;  %v1298_v8 = vadd.f32 %v3249_v30, %v2966_v6 }
 0x315   : > { %v3250_v32 = vpop.f32.mrb[30].mxu0  ;;  %v1290_v25 = vadd.f32 %v2966_v6, %v1289_v10 }
 0x316   : > { %v1301_v17 = vadd.f32 %v3250_v32, %v2966_v6  ;;  %v1292_v19 = vpop.f32.mrb[31].mxu0  ;;  %3284 = vmatmul.mubr.msk.f32.vlgmr.msra.gmra.mrb[24].mxu1 %vm1305_vm1, %v1304_v5 }
 0x317   : > { %v1293_v43 = vadd.f32 %v2966_v6, %v1292_v19  ;;  %3412 = vmatpush3.bf16.msra.mxu1 %v3411_v27  ;;  %3290 = vmatprep.mubr.msk.f32.mxu1 %vm3648_vm0, %v3649_v57 }
 0x318   : > { %v3417_v3 = vpack.c.bf16 %v1301_v17, %v1298_v8  ;;  %3413 = vmatprep.subr.bf16.mxu1 %v3647_v26 }
 0x319   : > { %v3414_v13 = vpack.c.bf16 %v1293_v43, %v1290_v25 }
 0x31a   : > { %3291 = vmatmul.mubr.msk.f32.vlgmr.msra.gmra.mrb[26].mxu1 %vm1305_vm1, %v1304_v5 }
 0x31b   : > { %3415 = vmatpush3.bf16.msra.mxu1 %v3414_v13  ;;  %3297 = vmatprep.mubr.msk.f32.mxu1 %vm3648_vm0, %v3649_v57 }
 0x31c   : > { %3416 = vmatprep.subr.bf16.mxu1 %v3647_v26 }
 0x31e   : > { %3298 = vmatmul.mubr.msk.f32.vlgmr.msra.gmra.mrb[28].mxu1 %vm1305_vm1, %v1304_v5 }
 0x31f   : > { %3418 = vmatpush3.bf16.msra.mxu1 %v3417_v3  ;;  %3304 = vmatprep.mubr.msk.f32.mxu1 %vm3648_vm0, %v3649_v57 }
 0x322   : > { %3305 = vmatmul.mubr.msk.f32.vlgmr.msra.gmra.mrb[30].mxu1 %vm1305_vm1, %v1304_v5 }
 0x3d9   : > { %v1375_v41 = vpop.f32.mrb[16].mxu1 }
 0x3da   : > { %v1869_v45 = vmul.f32 %v1375_v41, %v1375_v41  ;;  %v3257_v50 = vpop.f32.mrb[17].mxu1 }
 0x3dc   : > { %v1877_v33 = vmul.f32 %v1869_v45, %v1375_v41 }
 0x3dd   : > { %v1445_v28 = vpop.f32.mrb[18].mxu1 }
 0x3de   : > { %v1885_v62 = vmul.f32 0.044715, %v1877_v33  ;;  %v1870_v36 = vmul.f32 %v1445_v28, %v1445_v28  ;;  %v3264_v44 = vpop.f32.mrb[19].mxu1 }
 0x3e0   : > { %v1893_v42 = vadd.f32 %v1885_v62, %v1375_v41  ;;  %v1878_v52 = vmul.f32 %v1870_v36, %v1445_v28 }
 0x3e1   : > { %v4180_v53 = vpop.f32.mrb[20].mxu1 }
 0x3e2   : > { %v1901_v56 = vmul.f32 0.7978846, %v1893_v42  ;;  %v1886_v26 = vmul.f32 0.044715, %v1878_v52  ;;  %v1871_v57 = vmul.f32 %v4180_v53, %v4180_v53  ;;  %v3271_v31 = vpop.f32.mrb[21].mxu1 }
 0x3e4   : > { %3567 = vtanh.f32 %v1901_v56  ;;  %v1894_v6 = vadd.f32 %v1886_v26, %v1445_v28  ;;  %v1879_v46 = vmul.f32 %v1871_v57, %v4180_v53 }
 0x3e5   : > { %v4185_v14 = vpop.f32.mrb[22].mxu1 }
 0x3e6   : > { %v1902_v37 = vmul.f32 0.7978846, %v1894_v6  ;;  %v1887_v59 = vmul.f32 0.044715, %v1879_v46  ;;  %v1872_v60 = vmul.f32 %v4185_v14, %v4185_v14  ;;  %v3278_v61 = vpop.f32.mrb[23].mxu1 }
 0x3e8   : > { %3569 = vtanh.f32 %v1902_v37  ;;  %v1895_v63 = vadd.f32 %v1887_v59, %v4180_v53  ;;  %v1880_v0 = vmul.f32 %v1872_v60, %v4185_v14 }
 0x3e9   : > { %v4191_v1 = vpop.f32.mrb[24].mxu1 }
 0x3ea   : > { %v1903_v2 = vmul.f32 0.7978846, %v1895_v63  ;;  %v1888_v5 = vmul.f32 0.044715, %v1880_v0  ;;  %v1873_v7 = vmul.f32 %v4191_v1, %v4191_v1  ;;  %v3285_v9 = vpop.f32.mrb[25].mxu1 }
 0x3ec   : > { %3571 = vtanh.f32 %v1903_v2  ;;  %v1896_v11 = vadd.f32 %v1888_v5, %v4185_v14  ;;  %v1881_v12 = vmul.f32 %v1873_v7, %v4191_v1 }
 0x3ed   : > { %v1725_v49 = vpop.f32.mrb[26].mxu1 }
 0x3ee   : > { %v3568_v24 = vpop.eup %3567  ;;  %v1904_v47 = vmul.f32 0.7978846, %v1896_v11  ;;  %v1889_v58 = vmul.f32 0.044715, %v1881_v12  ;;  %v1874_v34 = vmul.f32 %v1725_v49, %v1725_v49  ;;  %v3292_v15 = vpop.f32.mrb[27].mxu1  ;;  %v4204_v11 = vld [vmem:[%s4363_s2] sm:$0xff] }
 0x3ef   : > { %v1917_v16 = vadd.f32 1.0, %v3568_v24  ;;  %3333 = vmatprep.mubr.msk.f32.mxu1 %vm2093_vm2, %v4204_v11 }
 0x3f0   : > { %3573 = vtanh.f32 %v1904_v47  ;;  %v1897_v18 = vadd.f32 %v1889_v58, %v4191_v1  ;;  %v1882_v20 = vmul.f32 %v1874_v34, %v1725_v49 }
 0x3f1   : > { %v1795_v55 = vpop.f32.mrb[28].mxu1  ;;  %v1925_v30 = vmul.f32 0.5, %v1917_v16  ;;  %v2090_v16 = vld [vmem:[%s4363_s2 + $0x8] sm:$0xff] }
 0x3f2   : > { %v3570_v21 = vpop.eup %3569  ;;  %v1905_v22 = vmul.f32 0.7978846, %v1897_v18  ;;  %v1890_v23 = vmul.f32 0.044715, %v1882_v20  ;;  %v1875_v27 = vmul.f32 %v1795_v55, %v1795_v55  ;;  %v3299_v29 = vpop.f32.mrb[29].mxu1  ;;  %v2091_v20 = vld [vmem:[%s4363_s2 + $0x10] sm:$0xff] }
 0x3f3   : > { %v1918_v10 = vadd.f32 1.0, %v3570_v21  ;;  %v1933_v38 = vmul.f32 %v1925_v30, %v1375_v41 }
 0x3f4   : > { %3575 = vtanh.f32 %v1905_v22  ;;  %v1898_v32 = vadd.f32 %v1890_v23, %v1725_v49  ;;  %v1883_v8 = vmul.f32 %v1875_v27, %v1795_v55 }
 0x3f5   : > { %v1926_v17 = vmul.f32 0.5, %v1918_v10  ;;  %v1865_v19 = vpop.f32.mrb[30].mxu1 }
 0x3f6   : > { %v3572_v25 = vpop.eup %3571  ;;  %v1906_v43 = vmul.f32 0.7978846, %v1898_v32  ;;  %v1891_v3 = vmul.f32 0.044715, %v1883_v8  ;;  %v1876_v13 = vmul.f32 %v1865_v19, %v1865_v19  ;;  %v3306_v35 = vpop.f32.mrb[31].mxu1 }
 0x3f7   : > { %v1934_v48 = vmul.f32 %v1926_v17, %v1445_v28  ;;  %v1919_v54 = vadd.f32 1.0, %v3572_v25 }
 0x3f8   : > { %3577 = vtanh.f32 %v1906_v43  ;;  %v1899_v51 = vadd.f32 %v1891_v3, %v1795_v55  ;;  %v1884_v4 = vmul.f32 %v1876_v13, %v1865_v19 }
 0x3f9   : > { %v1941_v39 = vpack.c.bf16 %v1934_v48, %v1933_v38  ;;  %v1927_v33 = vmul.f32 0.5, %v1919_v54 }
 0x3fa   : > { %v3574_v40 = vpop.eup %3573  ;;  %v1907_v45 = vmul.f32 0.7978846, %v1899_v51  ;;  %v1892_v50 = vmul.f32 0.044715, %v1884_v4 }
 0x3fb   : > { %v1920_v62 = vadd.f32 1.0, %v3574_v40  ;;  %3323 = vmatprep.mubr.bf16.mxu0 %v1941_v39  ;;  %v1935_v56 = vmul.f32 %v1927_v33, %v4180_v53 }
 0x3fc   : > { %3579 = vtanh.f32 %v1907_v45  ;;  %v1900_v36 = vadd.f32 %v1892_v50, %v1865_v19 }
 0x3fd   : > { %v1928_v44 = vmul.f32 0.5, %v1920_v62 }
 0x3fe   : > { %v3576_v42 = vpop.eup %3575  ;;  %v1908_v52 = vmul.f32 0.7978846, %v1900_v36 }
 0x3ff   : > { %v1936_v41 = vmul.f32 %v1928_v44, %v4185_v14  ;;  %v1921_v28 = vadd.f32 1.0, %v3576_v42 }
 0x400   : > { %3581 = vtanh.f32 %v1908_v52 }
 0x401   : > { %v1942_v26 = vpack.c.bf16 %v1936_v41, %v1935_v56  ;;  %v1929_v31 = vmul.f32 0.5, %v1921_v28 }
 0x402   : > { %v3578_v57 = vpop.eup %3577 }
 0x403   : > { %v1922_v6 = vadd.f32 1.0, %v3578_v57  ;;  %3324 = vmatmul.mubr.bf16.vlgmr.msra.gmra.mrb[32].mxu0 %v1942_v26  ;;  %v1937_v59 = vmul.f32 %v1929_v31, %v4191_v1  ;;  %v2983_v1 = vld [vmem:[%s4371_s10] ss:$0 sm:$0xff] }
 0x405   : > { %v1930_v46 = vmul.f32 0.5, %v1922_v6 }
 0x406   : > { %v3580_v37 = vpop.eup %3579 }
 0x407   : > { %v1938_v60 = vmul.f32 %v1930_v46, %v1725_v49  ;;  %v1923_v61 = vadd.f32 1.0, %v3580_v37 }
 0x409   : > { %v1943_v63 = vpack.c.bf16 %v1938_v60, %v1937_v59  ;;  %v1931_v53 = vmul.f32 0.5, %v1923_v61 }
 0x40a   : > { %v3582_v0 = vpop.eup %3581 }
 0x40b   : > { %v1924_v2 = vadd.f32 1.0, %v3582_v0  ;;  %3327 = vmatprep.mubr.bf16.mxu0 %v1943_v63  ;;  %v1939_v5 = vmul.f32 %v1931_v53, %v1795_v55  ;;  %v2092_v55 = vld [vmem:[%s4363_s2 + $0x18] sm:$0xff] }
 0x40d   : > { %v1932_v14 = vmul.f32 0.5, %v1924_v2 }
 0x40f   : > { %v1940_v7 = vmul.f32 %v1932_v14, %v1865_v19 }
 0x411   : > { %v1944_v9 = vpack.c.bf16 %v1940_v7, %v1939_v5 }
 0x413   : > { %3328 = vmatmul.mubr.bf16.gmra.mrb[36].mxu0 %v1944_v9 }
 0x414   : > { %3349 = vmatprep.mubr.msk.f32.mxu0 %vm2093_vm2, %v4204_v11 }
 0x4d6   : > { %v3325_v12 = vpop.f32.mrb[32].mxu0 }
 0x4d7   : > { %v2059_v49 = vadd.f32 %v3325_v12, %v2983_v1  ;;  %v2050_v24 = vpop.f32.mrb[33].mxu0 }
 0x4d8   : > { %v2051_v47 = vadd.f32 %v2983_v1, %v2050_v24  ;;  %v3326_v58 = vpop.f32.mrb[34].mxu0 }
 0x4d9   : > { %2083 = vst [vmem:[%s4216_s17 + $0x10] sm:$0xff] %v2059_v49  ;;  %v2062_v34 = vadd.f32 %v3326_v58, %v2983_v1  ;;  %v2053_v15 = vpop.f32.mrb[35].mxu0  ;;  %3347 = vmatprep.subr.mxu0 %v2059_v49 }
 0x4da   : > { %2081 = vst [vmem:[%s4216_s17] sm:$0xff] %v2051_v47  ;;  %v2054_v18 = vadd.f32 %v2983_v1, %v2053_v15  ;;  %3331 = vmatprep.subr.mxu1 %v2051_v47  ;;  %3348 = vmatpush3.msra.mxu0 %v2059_v49 }
 0x4db   : > { %2084 = vst [vmem:[%s4216_s17 + $0x18] sm:$0xff] %v2062_v34  ;;  %3332 = vmatpush3.msra.mxu1 %v2051_v47  ;;  %3350 = vmatmul.mubr.msk.f32.vlgmr.msra.gmra.mrb[40].mxu0 %vm2093_vm2, %v2090_v16 }
 0x4dc   : > { %2082 = vst [vmem:[%s4216_s17 + $0x8] sm:$0xff] %v2054_v18  ;;  %3334 = vmatmul.mubr.msk.f32.vlgmr.msra.gmra.mrb[32].mxu1 %vm2093_vm2, %v2090_v16  ;;  %3339 = vmatprep.subr.mxu1 %v2054_v18 }
 0x4dd   : > { %3340 = vmatpush3.msra.mxu1 %v2054_v18  ;;  %3336 = vmatprep.mubr.msk.f32.mxu1 %vm2093_vm2, %v2091_v20 }
 0x4de   : > { %3355 = vmatprep.subr.mxu1 %v2062_v34  ;;  %3352 = vmatprep.mubr.msk.f32.mxu0 %vm2093_vm2, %v2091_v20 }
 0x4df   : > { %3353 = vmatmul.mubr.msk.f32.gmra.mrb[42].mxu0 %vm2093_vm2, %v2092_v55 }
 0x4e0   : > { %3337 = vmatmul.mubr.msk.f32.gmra.mrb[34].mxu1 %vm2093_vm2, %v2092_v55  ;;  %3365 = vmatprep.mubr.msk.f32.mxu0 %vm2093_vm2, %v4204_v11 }
 0x4e1   : > { %3341 = vmatprep.mubr.msk.f32.mxu1 %vm2093_vm2, %v4204_v11 }
 0x4e4   : > { %3342 = vmatmul.mubr.msk.f32.vlgmr.msra.gmra.mrb[36].mxu1 %vm2093_vm2, %v2090_v16 }
 0x4e5   : > { %3356 = vmatpush3.msra.mxu1 %v2062_v34  ;;  %3344 = vmatprep.mubr.msk.f32.mxu1 %vm2093_vm2, %v2091_v20 }
 0x4e6   : > { %v3329_v21 = vpop.f32.mrb[36].mxu0 }
 0x4e7   : > { %v2075_v22 = vadd.f32 %v3329_v21, %v2983_v1  ;;  %v2066_v23 = vpop.f32.mrb[37].mxu0 }
 0x4e8   : > { %v2067_v27 = vadd.f32 %v2983_v1, %v2066_v23  ;;  %v3330_v29 = vpop.f32.mrb[38].mxu0  ;;  %3345 = vmatmul.mubr.msk.f32.gmra.mrb[38].mxu1 %vm2093_vm2, %v2092_v55 }
 0x4e9   : > { %2087 = vst [vmem:[%s4216_s17 + $0x30] sm:$0xff] %v2075_v22  ;;  %v2078_v30 = vadd.f32 %v3330_v29, %v2983_v1  ;;  %v2069_v10 = vpop.f32.mrb[39].mxu0  ;;  %3357 = vmatprep.mubr.msk.f32.mxu1 %vm2093_vm2, %v4204_v11 }
 0x4ea   : > { %2085 = vst [vmem:[%s4216_s17 + $0x20] sm:$0xff] %v2067_v27  ;;  %v2070_v32 = vadd.f32 %v2983_v1, %v2069_v10  ;;  %3363 = vmatprep.subr.mxu0 %v2067_v27 }
 0x4eb   : > { %2088 = vst [vmem:[%s4216_s17 + $0x38] sm:$0xff] %v2078_v30  ;;  %3364 = vmatpush3.msra.mxu0 %v2067_v27 }
 0x4ec   : > { %2086 = vst [vmem:[%s4216_s17 + $0x28] sm:$0xff] %v2070_v32  ;;  %3358 = vmatmul.mubr.msk.f32.vlgmr.msra.gmra.mrb[40].mxu1 %vm2093_vm2, %v2090_v16  ;;  %3371 = vmatprep.subr.mxu1 %v2070_v32  ;;  %s3587_s17 = sshll.u32 %s3650_s16, 4  ;;  %s3588_s17 = int_to_ptr.vmem [resolvable:$false] %s3587_s17 }
 0x4ed   : > { %3379 = vmatprep.subr.mxu0 %v2075_v22  ;;  %3366 = vmatmul.mubr.msk.f32.vlgmr.msra.gmra.mrb[44].mxu0 %vm2093_vm2, %v2090_v16  ;;  %s3589_s0 = scalar_lea.vmem %s3588_s17, 2048  ;;  %p3590_p0 = scmp.lt.s32.totalorder %s4278_s19, %s3588_s17 }
 0x4ee   : > { %3372 = vmatpush3.msra.mxu1 %v2070_v32  ;;  %3380 = vmatpush3.msra.mxu0 %v2075_v22  ;;  %p3591_p1 = scmp.lt.s32.totalorder %s3589_s0, %s3583_s28 }
 0x4ef   : > { %3387 = vmatprep.subr.mxu1 %v2078_v30  ;;  %3360 = vmatprep.mubr.msk.f32.mxu1 %vm2093_vm2, %v2091_v20 }
 0x4f0   : > { %3361 = vmatmul.mubr.msk.f32.gmra.mrb[42].mxu1 %vm2093_vm2, %v2092_v55  ;;  %3368 = vmatprep.mubr.msk.f32.mxu0 %vm2093_vm2, %v2091_v20  ;;  %p3592_p2 = por %p3591_p1, %p3590_p0 }
 0x4f1   : > { %3373 = vmatprep.mubr.msk.f32.mxu1 %vm2093_vm2, %v4204_v11  ;;  %3369 = vmatmul.mubr.msk.f32.gmra.mrb[46].mxu0 %vm2093_vm2, %v2092_v55 }
 0x4f2   : > { %3381 = vmatprep.mubr.msk.f32.mxu0 %vm2093_vm2, %v4204_v11  ;;  %p3593_p3 = pnand %p3592_p2, %p3586_p13 }
 0x4f4   : > { %3374 = vmatmul.mubr.msk.f32.vlgmr.msra.gmra.mrb[44].mxu1 %vm2093_vm2, %v2090_v16 }
 0x4f5   : > { %3388 = vmatpush3.msra.mxu1 %v2078_v30  ;;  %3376 = vmatprep.mubr.msk.f32.mxu1 %vm2093_vm2, %v2091_v20 }
 0x4f6   : > { %3382 = vmatmul.mubr.msk.f32.vlgmr.msra.gmra.mrb[48].mxu0 %vm2093_vm2, %v2090_v16 }
 0x4f7   : > { %3384 = vmatprep.mubr.msk.f32.mxu0 %vm2093_vm2, %v2091_v20 }
 0x4f8   : > { %3377 = vmatmul.mubr.msk.f32.gmra.mrb[46].mxu1 %vm2093_vm2, %v2092_v55 }
 0x4f9   : > { %3389 = vmatprep.mubr.msk.f32.mxu1 %vm2093_vm2, %v4204_v11 }
 0x4fa   : > { %3385 = vmatmul.mubr.msk.f32.gmra.mrb[50].mxu0 %vm2093_vm2, %v2092_v55 }
 0x4fc   : > { %3390 = vmatmul.mubr.msk.f32.vlgmr.msra.gmra.mrb[48].mxu1 %vm2093_vm2, %v2090_v16 }
 0x4fd   : > { %3392 = vmatprep.mubr.msk.f32.mxu1 %vm2093_vm2, %v2091_v20 }
 0x500   : > { %3393 = vmatmul.mubr.msk.f32.gmra.mrb[50].mxu1 %vm2093_vm2, %v2092_v55 }
 0x501   : > { %3596 = shalt.err (!%p3593_p3)
}
 0x502   : > { %s3597_s29 = scalar_lea.hbm %s4276_s26, 1024  ;;  %s3601_s20 = scalar_lea.hbm %s4372_s11, 2048 }
 0x503   : > { %p3598_p4 = scmp.ne.s32.totalorder %s4276_s26, %s3597_s29  ;;  %p3602_p9 = scmp.lt.u32.totalorder %s4276_s26, %s4372_s11 }
 0x504   : > { %p3603_p10 = scmp.lt.u32.totalorder %s3601_s20, %s3597_s29  ;;  %p3605_p12 = scmp.lt.u32.totalorder %s3597_s29, %s4276_s26 }
 0x505   : > { %p3599_p7 = pnand %p3598_p4, %p3756_p5 }
 0x506   : > { %p3604_p11 = por %p3603_p10, %p3602_p9 }
 0x507   : > { %p3600_p8 = pneg %p3599_p7 }
 0x508   : > { %p3606_p13 = por %p3605_p12, %p3604_p11 }
 0x50a   : > { %p3607_p0 = pnand %p3606_p13, %p3600_p8 }
 0x50c   : > { %3610 = shalt.err (!%p3607_p0)
}
 0x50d   : > { %s3651_s0 = smov 128   ;;  %s3652_s28 = smov 8  }
 0x50e   : > { %3419 = dma.vmem_to_hbm [thread:$0]  (%p3756_p5), %s4278_s19, 1024, %s4276_s26, %s4282_s15, %s3651_s0, %s3651_s0, %s3652_s28  }
 0x50f   : > { %s2937_s18 = sshll.u32 %s3739_s25, 3 }
 0x510   : > { %p425_p1 = scmp.lt.s32.totalorder %s2937_s18, 15 }
 0x512   : > { %s4387_s18 = smov (!%p425_p1, %s2937_s18), 15 }
 0x513   : > { %s3029_s30 = sshll.u32 %s4387_s18, 5 }
 0x514   : > { %s4310_s29 = scalar_lea.vmem %s4373_s12, %s3029_s30 }
 0x5ae   : > { %v3351_v8 = vpop.f32.mrb[40].mxu0 }
 0x5af   : > { %v3335_v17 = vpop.f32.mrb[32].mxu1  ;;  %2795 = vst [vmem:[%s4310_s29 + $0x48] sm:$0xff] %v3351_v8  ;;  %v2342_v19 = vpop.f32.mrb[41].mxu0 }
 0x5b0   : > { %2787 = vst [vmem:[%s4310_s29 + $0x8] sm:$0xff] %v3335_v17  ;;  %v2172_v25 = vpop.f32.mrb[33].mxu1  ;;  %2794 = vst [vmem:[%s4310_s29 + $0x40] sm:$0xff] %v2342_v19 }
 0x5b1   : > { %2786 = vst [vmem:[%s4310_s29] sm:$0xff] %v2172_v25 }
 0x5b2   : > { %v3354_v43 = vpop.f32.mrb[42].mxu0 }
 0x5b3   : > { %v3338_v3 = vpop.f32.mrb[34].mxu1  ;;  %2797 = vst [vmem:[%s4310_s29 + $0x58] sm:$0xff] %v3354_v43  ;;  %v2352_v13 = vpop.f32.mrb[43].mxu0 }
 0x5b4   : > { %2789 = vst [vmem:[%s4310_s29 + $0x18] sm:$0xff] %v3338_v3  ;;  %v2182_v35 = vpop.f32.mrb[35].mxu1  ;;  %2796 = vst [vmem:[%s4310_s29 + $0x50] sm:$0xff] %v2352_v13 }
 0x5b5   : > { %2788 = vst [vmem:[%s4310_s29 + $0x10] sm:$0xff] %v2182_v35 }
 0x5b7   : > { %v3343_v38 = vpop.f32.mrb[36].mxu1 }
 0x5b8   : > { %2791 = vst [vmem:[%s4310_s29 + $0x28] sm:$0xff] %v3343_v38  ;;  %v2257_v48 = vpop.f32.mrb[37].mxu1 }
 0x5b9   : > { %2790 = vst [vmem:[%s4310_s29 + $0x20] sm:$0xff] %v2257_v48 }
 0x5bb   : > { %v3346_v54 = vpop.f32.mrb[38].mxu1 }
 0x5bc   : > { %2793 = vst [vmem:[%s4310_s29 + $0x38] sm:$0xff] %v3346_v54  ;;  %v2267_v51 = vpop.f32.mrb[39].mxu1 }
 0x5bd   : > { %2792 = vst [vmem:[%s4310_s29 + $0x30] sm:$0xff] %v2267_v51 }
 0x5bf   : > { %v3359_v4 = vpop.f32.mrb[40].mxu1 }
 0x5c0   : > { %2799 = vst [vmem:[%s4310_s29 + $0x68] sm:$0xff] %v3359_v4  ;;  %v2427_v39 = vpop.f32.mrb[41].mxu1  ;;  %v3367_v40 = vpop.f32.mrb[44].mxu0 }
 0x5c1   : > { %2798 = vst [vmem:[%s4310_s29 + $0x60] sm:$0xff] %v2427_v39  ;;  %2803 = vst [vmem:[%s4310_s29 + $0x88] sm:$0xff] %v3367_v40  ;;  %v2512_v45 = vpop.f32.mrb[45].mxu0 }
 0x5c2   : > { %2802 = vst [vmem:[%s4310_s29 + $0x80] sm:$0xff] %v2512_v45 }
 0x5c3   : > { %v3362_v50 = vpop.f32.mrb[42].mxu1 }
 0x5c4   : > { %2801 = vst [vmem:[%s4310_s29 + $0x78] sm:$0xff] %v3362_v50  ;;  %v2437_v33 = vpop.f32.mrb[43].mxu1  ;;  %v3370_v62 = vpop.f32.mrb[46].mxu0 }
 0x5c5   : > { %2800 = vst [vmem:[%s4310_s29 + $0x70] sm:$0xff] %v2437_v33  ;;  %2805 = vst [vmem:[%s4310_s29 + $0x98] sm:$0xff] %v3370_v62  ;;  %v2522_v36 = vpop.f32.mrb[47].mxu0 }
 0x5c6   : > { %2804 = vst [vmem:[%s4310_s29 + $0x90] sm:$0xff] %v2522_v36 }
 0x5c7   : > { %v3375_v44 = vpop.f32.mrb[44].mxu1 }
 0x5c8   : > { %2807 = vst [vmem:[%s4310_s29 + $0xa8] sm:$0xff] %v3375_v44  ;;  %v2597_v42 = vpop.f32.mrb[45].mxu1 }
 0x5c9   : > { %2806 = vst [vmem:[%s4310_s29 + $0xa0] sm:$0xff] %v2597_v42  ;;  %v3383_v52 = vpop.f32.mrb[48].mxu0 }
 0x5ca   : > { %2811 = vst [vmem:[%s4310_s29 + $0xc8] sm:$0xff] %v3383_v52  ;;  %v2682_v56 = vpop.f32.mrb[49].mxu0 }
 0x5cb   : > { %v3378_v41 = vpop.f32.mrb[46].mxu1  ;;  %2810 = vst [vmem:[%s4310_s29 + $0xc0] sm:$0xff] %v2682_v56 }
 0x5cc   : > { %2809 = vst [vmem:[%s4310_s29 + $0xb8] sm:$0xff] %v3378_v41  ;;  %v2607_v28 = vpop.f32.mrb[47].mxu1 }
 0x5cd   : > { %2808 = vst [vmem:[%s4310_s29 + $0xb0] sm:$0xff] %v2607_v28  ;;  %v3386_v26 = vpop.f32.mrb[50].mxu0 }
 0x5ce   : > { %2813 = vst [vmem:[%s4310_s29 + $0xd8] sm:$0xff] %v3386_v26  ;;  %v2692_v57 = vpop.f32.mrb[51].mxu0 }
 0x5cf   : > { %v3391_v31 = vpop.f32.mrb[48].mxu1  ;;  %2812 = vst [vmem:[%s4310_s29 + $0xd0] sm:$0xff] %v2692_v57 }
 0x5d0   : > { %2815 = vst [vmem:[%s4310_s29 + $0xe8] sm:$0xff] %v3391_v31  ;;  %v2767_v6 = vpop.f32.mrb[49].mxu1 }
 0x5d1   : > { %2814 = vst [vmem:[%s4310_s29 + $0xe0] sm:$0xff] %v2767_v6 }
 0x5d3   : > { %v3394_v46 = vpop.f32.mrb[50].mxu1 }
 0x5d4   : > { %2817 = vst [vmem:[%s4310_s29 + $0xf8] sm:$0xff] %v3394_v46  ;;  %v2777_v37 = vpop.f32.mrb[51].mxu1 }
 0x5d5   : > { %2816 = vst [vmem:[%s4310_s29 + $0xf0] sm:$0xff] %v2777_v37 }
 0x5d6 PF: > { %p3425_p5 = scmp.ge.s32.totalorder %s3645_s24, 2  ;;  %s2857_s25 = sand.u32 1, %s3633_s21  }
 0x5d7   : > { %s2858_s13 = scalar_lea.sflag [#allocation3], %s2857_s25 }
 0x5d8   : > { %p3422_p2 = pnand %p3425_p5, %p3760_p6 }
 0x5da   : > { %3628 = dma.done.wait (!%p3422_p2), %s2858_s13, 1024  }
 0x5db   : > { %3630 = vsyncadd (!%p3422_p2), %s2858_s13, 4294966272  ;;  %s4379_s19 = sld [smem:[#allocation5_spill]]  ;;  %p23_p3 = scmp.ge.s32.totalorder %s3743_s27, 4  }
 0x5dc   : > { %s4380_s21 = smov %s3637_s22  ;;  %s4381_s22 = smov %s3641_s23 }
 0x5dd   : > { %s4383_s24 = smov %s3743_s27  ;;  %25 = sbr.rel (!%p23_p3) target bundleno = 5 (0x5), region = 111 }
 0x5e1   : > { %s4382_s23 = smov %s4379_s19 }
 0x5e4   :  { %2872 = vsyncpa [#allocation3], 1 }
 0x5e5   :  { %2874 = vsyncpa [#allocation3 + $0x1], 1 }

</bundles_post_ra>
